<compile_context>
chip_gen: v7x
topology: tpu7x:2x2x1
jax: 0.10.0
libtpu: 0.0.40
codegen_flags: <defaults>
</compile_context>

<pallas_src>
import math
import functools

import jax
import jax.numpy as jnp
from jax.experimental import pallas as pl
from jax.experimental.pallas import tpu as pltpu


# ----------------------------------------------------------------------------
# Tile selection helpers (respect the (8, 128) block constraints)
# ----------------------------------------------------------------------------

def _sublane_tile(dim, target):
    """Tile for a second-to-last block dim: multiple of 8, or the full dim."""
    if dim <= target:
        return dim
    return max(8, (target // 8) * 8)


def _lane_tile(dim, target):
    """Tile for a last (lane) block dim: multiple of 128, or the full dim."""
    if dim <= target:
        return dim
    t = (target // 128) * 128
    return t if t >= 128 else dim


def _contract_tile(dim, target):
    """Contraction-dim tile: must divide evenly (padding would corrupt the sum)."""
    if dim <= target:
        return dim
    t = (target // 128) * 128
    while t >= 128:
        if dim % t == 0:
            return t
        t -= 128
    return dim  # fall back to untiled K


# ----------------------------------------------------------------------------
# Tiled linear: y = [LN](x) @ W + b (+ GELU) (+ residual)
# bf16 MXU inputs, f32 VMEM accumulator, optional fused LayerNorm prologue.
# ----------------------------------------------------------------------------

def _linear_kernel(*refs, has_ln, has_bias, activation, fuse_residual):
    it = iter(refs)
    x_ref = next(it)
    g_ref = next(it) if has_ln else None
    be_ref = next(it) if has_ln else None
    w_ref = next(it)
    bias_ref = next(it) if has_bias else None
    res_ref = next(it) if fuse_residual else None
    o_ref = next(it)
    acc_ref = next(it)

    kk = pl.program_id(2)

    @pl.when(kk == 0)
    def _():
        acc_ref[...] = jnp.zeros_like(acc_ref)

    x = x_ref[...].astype(jnp.float32)
    if has_ln:
        # Fused LayerNorm: only valid when the K axis is a single block (tk == K).
        mean = jnp.mean(x, axis=-1, keepdims=True)
        xc = x - mean
        var = jnp.mean(xc * xc, axis=-1, keepdims=True)
        x = xc * jax.lax.rsqrt(var + 1e-5) * g_ref[...] + be_ref[...]

    acc_ref[...] += jnp.dot(
        x.astype(jnp.bfloat16),
        w_ref[...].astype(jnp.bfloat16),
        preferred_element_type=jnp.float32,
    )

    @pl.when(kk == pl.num_programs(2) - 1)
    def _():
        y = acc_ref[...]
        if has_bias:
            y = y + bias_ref[...].astype(jnp.float32)
        if activation == "gelu":
            # exact erf-GELU (matches torch.nn.GELU default), computed in f32
            y = 0.5 * y * (1.0 + jax.lax.erf(y * jnp.float32(1.0 / math.sqrt(2.0))))
        if fuse_residual:
            y = y + res_ref[...].astype(jnp.float32)
        o_ref[...] = y.astype(o_ref.dtype)


def linear(x2d, w, bias=None, *, ln=None, activation=None, residual=None,
           out_dtype=None, tm=512, tn=1024, tk=1024):
    M, K = x2d.shape
    Kw, N = w.shape
    assert K == Kw
    out_dtype = x2d.dtype if out_dtype is None else out_dtype

    if ln is not None:
        tk = K                      # LN prologue needs the full feature dim
    tm = _sublane_tile(M, tm)
    tn = _lane_tile(N, tn)
    tk = _contract_tile(K, tk)
    if ln is not None:
        assert tk == K, "fused LayerNorm requires an untiled contraction dim"
    grid = (pl.cdiv(M, tm), pl.cdiv(N, tn), K // tk)

    in_specs = [pl.BlockSpec((tm, tk), lambda i, j, kk: (i, kk))]
    args = [x2d]
    if ln is not None:
        g, be = ln
        in_specs += [pl.BlockSpec((1, K), lambda i, j, kk: (0, 0)),
                     pl.BlockSpec((1, K), lambda i, j, kk: (0, 0))]
        args += [g.reshape(1, K).astype(jnp.float32),
                 be.reshape(1, K).astype(jnp.float32)]
    in_specs.append(pl.BlockSpec((tk, tn), lambda i, j, kk: (kk, j)))
    args.append(w)
    if bias is not None:
        in_specs.append(pl.BlockSpec((1, tn), lambda i, j, kk: (0, j)))
        args.append(bias.reshape(1, N).astype(jnp.float32))
    if residual is not None:
        in_specs.append(pl.BlockSpec((tm, tn), lambda i, j, kk: (i, j)))
        args.append(residual)

    kernel = functools.partial(
        _linear_kernel,
        has_ln=ln is not None,
        has_bias=bias is not None,
        activation=activation,
        fuse_residual=residual is not None,
    )

    bytes_accessed = (
        M * K * x2d.dtype.itemsize
        + K * N * w.dtype.itemsize
        + M * N * jnp.dtype(out_dtype).itemsize
        + (M * N * residual.dtype.itemsize if residual is not None else 0)
        + (N * 4 if bias is not None else 0)
    )
    cost = pl.CostEstimate(
        flops=2 * M * N * K,
        transcendentals=M * N if activation == "gelu" else 0,
        bytes_accessed=bytes_accessed,
    )
    return pl.pallas_call(
        kernel,
        out_shape=jax.ShapeDtypeStruct((M, N), out_dtype),
        grid=grid,
        in_specs=in_specs,
        out_specs=pl.BlockSpec((tm, tn), lambda i, j, kk: (i, j)),
        scratch_shapes=[pltpu.VMEM((tm, tn), jnp.float32)],
        compiler_params=pltpu.CompilerParams(
            dimension_semantics=("parallel", "parallel", "arbitrary"),
            vmem_limit_bytes=48 * 1024 * 1024,
        ),
        cost_estimate=cost,
    )(*args)


# ----------------------------------------------------------------------------
# Flash (online-softmax) causal attention, all heads batched per grid step
# ----------------------------------------------------------------------------

def _flash_attn_kernel(q_ref, k_ref, v_ref, o_ref, m_sc, l_sc, acc_sc, *, scale):
    qi = pl.program_id(1)
    ki = pl.program_id(2)
    _, tq, _ = q_ref.shape
    tkv = k_ref.shape[1]

    @pl.when(ki == 0)
    def _init():
        m_sc[...] = jnp.full(m_sc.shape, -1e30, jnp.float32)
        l_sc[...] = jnp.zeros(l_sc.shape, jnp.float32)
        acc_sc[...] = jnp.zeros(acc_sc.shape, jnp.float32)

    @pl.when(ki <= qi)                       # causal block skip (tq == tkv)
    def _update():
        row = qi * tq + jax.lax.broadcasted_iota(jnp.int32, (tq, tkv), 0)
        col = ki * tkv + jax.lax.broadcasted_iota(jnp.int32, (tq, tkv), 1)
        causal = (col <= row)[None, :, :]    # (1, tq, tkv), broadcasts over heads

        # fold the 1/sqrt(D) scale into the (small) q tile, not the score matrix
        q = (q_ref[...].astype(jnp.float32) * jnp.float32(scale)).astype(jnp.bfloat16)
        k = k_ref[...].astype(jnp.bfloat16)
        v = v_ref[...].astype(jnp.bfloat16)

        s = jnp.einsum("hqd,hkd->hqk", q, k,
                       preferred_element_type=jnp.float32)      # (H, tq, tkv)
        s = jnp.where(causal, s, jnp.float32(-1e30))

        m_prev = m_sc[...]                                      # (H, tq, 1)
        m_new = jnp.maximum(m_prev, jnp.max(s, axis=-1, keepdims=True))
        alpha = jnp.exp(m_prev - m_new)
        p = jnp.exp(s - m_new)                                  # (H, tq, tkv)
        l_sc[...] = alpha * l_sc[...] + jnp.sum(p, axis=-1, keepdims=True)
        acc_sc[...] = alpha * acc_sc[...] + jnp.einsum(
            "hqk,hkd->hqd", p.astype(jnp.bfloat16), v,
            preferred_element_type=jnp.float32)
        m_sc[...] = m_new

    @pl.when(ki == qi)                        # diagonal block is last contribution
    def _finalize():
        inv = pl.reciprocal(l_sc[...], approx=True)             # (H, tq, 1), EUP
        o_ref[...] = (acc_sc[...] * inv).astype(o_ref.dtype)    # single full store


def causal_attention(qkv, B, T, *, n_head):
    """Causal SDPA. qkv: (B*T, 3C) packed projections; returns (B*T, C)."""
    M, C3 = qkv.shape
    assert M == B * T
    C = C3 // 3
    assert 3 * C == C3 and C % n_head == 0
    H = n_head
    D = C // H
    scale = 1.0 / math.sqrt(D)
    tq = T if T <= 128 else 128
    nq = pl.cdiv(T, tq)

    # One metadata reshape + one transpose (XLA glue) so BlockSpecs can deliver
    # (H, tq, D) head-batched tiles directly to the kernel; no in-kernel slicing.
    qkv_h = qkv.reshape(B, T, 3, H, D).transpose(2, 0, 3, 1, 4)   # (3, B, H, T, D)

    blk = (None, None, H, tq, D)
    # K/V index maps clamp to min(ki, qi): skipped upper-triangular steps re-use
    # the already-resident block instead of DMA'ing data the kernel discards.
    q_spec = pl.BlockSpec(blk, lambda b, qi, ki: (0, b, 0, qi, 0))
    k_spec = pl.BlockSpec(blk, lambda b, qi, ki: (1, b, 0, jnp.minimum(ki, qi), 0))
    v_spec = pl.BlockSpec(blk, lambda b, qi, ki: (2, b, 0, jnp.minimum(ki, qi), 0))

    kernel = functools.partial(_flash_attn_kernel, scale=scale)
    out = pl.pallas_call(
        kernel,
        out_shape=jax.ShapeDtypeStruct((B, H, T, D), qkv.dtype),
        grid=(B, nq, nq),
        in_specs=[q_spec, k_spec, v_spec],
        out_specs=pl.BlockSpec((None, H, tq, D), lambda b, qi, ki: (b, 0, qi, 0)),
        scratch_shapes=[
            pltpu.VMEM((H, tq, 1), jnp.float32),   # running max
            pltpu.VMEM((H, tq, 1), jnp.float32),   # running denom
            pltpu.VMEM((H, tq, D), jnp.float32),   # running output
        ],
        compiler_params=pltpu.CompilerParams(
            dimension_semantics=("parallel", "parallel", "arbitrary")),
    )(qkv_h, qkv_h, qkv_h)

    return out.transpose(0, 2, 1, 3).reshape(M, C)   # back to lane-dense (M, C)


# ----------------------------------------------------------------------------
# Parameter initialization (matches module __init__ shapes; linear weights bf16)
# ----------------------------------------------------------------------------

def init_params(key, *, vocab_size, block_size, n_layer, n_head, n_embd):
    C = n_embd
    std = 0.02

    def normal(k, shape, dtype=jnp.float32):
        return (std * jax.random.normal(k, shape)).astype(dtype)

    keys = iter(jax.random.split(key, 2 + 4 * n_layer))
    wte = normal(next(keys), (vocab_size, C))              # f32, tied with lm_head
    params = {
        "wte": wte,
        "wte_t_bf16": wte.T.astype(jnp.bfloat16),          # one-time (C, V) bf16 copy
        "wpe": normal(next(keys), (block_size, C)),
        "lnf_g": jnp.ones((C,), jnp.float32),
        "lnf_b": jnp.zeros((C,), jnp.float32),
        "blocks": [],
    }
    for _ in range(n_layer):
        blk = {
            "ln1_g": jnp.ones((C,), jnp.float32),
            "ln1_b": jnp.zeros((C,), jnp.float32),
            "ln2_g": jnp.ones((C,), jnp.float32),
            "ln2_b": jnp.zeros((C,), jnp.float32),
            # stored as (in, out) = transpose of torch nn.Linear weight, bf16
            "attn_w": normal(next(keys), (C, 3 * C), jnp.bfloat16),
            "attn_b": jnp.zeros((3 * C,), jnp.float32),
            "attn_proj_w": normal(next(keys), (C, C), jnp.bfloat16),
            "attn_proj_b": jnp.zeros((C,), jnp.float32),
            "fc_w": normal(next(keys), (C, 4 * C), jnp.bfloat16),
            "fc_b": jnp.zeros((4 * C,), jnp.float32),
            "mlp_proj_w": normal(next(keys), (4 * C, C), jnp.bfloat16),
            "mlp_proj_b": jnp.zeros((C,), jnp.float32),
        }
        params["blocks"].append(blk)
    return params


# ----------------------------------------------------------------------------
# GPT forward pass
# ----------------------------------------------------------------------------

def gpt_forward(params, idx, *, n_head):
    B, T = idx.shape
    wte = params["wte"]                       # (V, C) f32
    wpe = params["wpe"]                       # (block_size, C)
    C = wte.shape[1]
    M = B * T

    # TODO(synk): embedding gather kept as XLA glue (no clean Pallas gather here).
    x = jnp.take(wte, idx, axis=0) + wpe[None, :T, :]
    x = x.astype(jnp.float32).reshape(M, C)   # residual stream, (B*T, C), f32

    for blk in params["blocks"]:
        # --- attention sub-block: LN1 fused into qkv projection, bf16 qkv ---
        qkv = linear(x, blk["attn_w"], blk["attn_b"],
                     ln=(blk["ln1_g"], blk["ln1_b"]),
                     out_dtype=jnp.bfloat16)                   # (M, 3C) bf16
        y = causal_attention(qkv, B, T, n_head=n_head)         # (M, C) bf16
        x = linear(y, blk["attn_proj_w"], blk["attn_proj_b"],
                   residual=x, out_dtype=jnp.float32)          # fused residual add

        # --- MLP sub-block: LN2 + GELU fused, bf16 intermediate ---
        m = linear(x, blk["fc_w"], blk["fc_b"],
                   ln=(blk["ln2_g"], blk["ln2_b"]), activation="gelu",
                   out_dtype=jnp.bfloat16)                     # (M, 4C) bf16
        x = linear(m, blk["mlp_proj_w"], blk["mlp_proj_b"],
                   residual=x, out_dtype=jnp.float32)

    # final LayerNorm fused into the tied lm_head (bf16 wte.T, no bias)
    logits = linear(x, params["wte_t_bf16"], None,
                    ln=(params["lnf_g"], params["lnf_b"]),
                    out_dtype=jnp.float32)
    # TODO(synk): cross-entropy loss path (targets != None) not implemented.
    return logits.reshape(B, T, -1)


# ----------------------------------------------------------------------------
# Main
# ----------------------------------------------------------------------------

if __name__ == "__main__":
    vocab_size = 256
    block_size = 16
    n_layer = 2
    n_head = 4
    n_embd = 32
    B, T = 2, 8

    key = jax.random.PRNGKey(0)
    pkey, ikey = jax.random.split(key)
    params = init_params(
        pkey,
        vocab_size=vocab_size,
        block_size=block_size,
        n_layer=n_layer,
        n_head=n_head,
        n_embd=n_embd,
    )
    idx = jax.random.randint(ikey, (B, T), 0, vocab_size, dtype=jnp.int32)

    fwd = jax.jit(functools.partial(gpt_forward, n_head=n_head))
    logits = fwd(params, idx)
    logits = jax.block_until_ready(logits)

    assert logits.shape == (B, T, vocab_size), logits.shape
    assert logits.dtype == jnp.float32
    assert bool(jnp.all(jnp.isfinite(logits)))
    print("KERNEL_OK")
</pallas_src>

<mosaic_0001>
module attributes {stable_mosaic.version = 11 : i64} {
  func.func @_linear_kernel(%arg0: i32, %arg1: i32, %arg2: i32, %arg3: memref<16x32xf32, #tpu.memory_space<vmem>>, %arg4: memref<1x32xf32, #tpu.memory_space<vmem>>, %arg5: memref<1x32xf32, #tpu.memory_space<vmem>>, %arg6: memref<32x96xbf16, #tpu.memory_space<vmem>>, %arg7: memref<1x96xf32, #tpu.memory_space<vmem>>, %arg8: memref<16x96xbf16, #tpu.memory_space<vmem>>, %arg9: memref<16x96xf32, #tpu.memory_space<vmem>>) attributes {dimension_semantics = [#tpu.dimension_semantics<parallel>, #tpu.dimension_semantics<parallel>, #tpu.dimension_semantics<arbitrary>], iteration_bounds = array<i64: 1, 1, 1>, scalar_prefetch = 0 : i64, scratch_operands = 1 : i64, tpu.core_type = #tpu.core_type<tc>, window_params = [{transform_indices = @transform_0, window_bounds = array<i64: 16, 32>}, {pipeline_mode = #tpu.pipeline_mode<synchronous>, transform_indices = @transform_1, window_bounds = array<i64: 1, 32>}, {pipeline_mode = #tpu.pipeline_mode<synchronous>, transform_indices = @transform_2, window_bounds = array<i64: 1, 32>}, {transform_indices = @transform_3, window_bounds = array<i64: 32, 96>}, {transform_indices = @transform_4, window_bounds = array<i64: 1, 96>}, {transform_indices = @transform_5, window_bounds = array<i64: 16, 96>}]} {
    %c0_i32 = arith.constant 0 : i32
    %0 = arith.cmpi eq, %arg2, %c0_i32 : i32
    %1 = arith.extui %0 : i1 to i32
    %c0_i32_0 = arith.constant 0 : i32
    %2 = arith.cmpi ne, %1, %c0_i32_0 : i32
    scf.if %2 {
      %cst_19 = arith.constant 0.000000e+00 : f32
      %35 = vector.broadcast %cst_19 : f32 to vector<16x96xf32>
      %c0_20 = arith.constant 0 : index
      %c0_21 = arith.constant 0 : index
      %36 = vector.load %arg9[%c0_20, %c0_21] : memref<16x96xf32, #tpu.memory_space<vmem>>, vector<16x96xf32>
      tpu.vector_store %arg9[%c0_20, %c0_21], %35 {strides = array<i32>} : memref<16x96xf32, #tpu.memory_space<vmem>>, vector<16x96xf32>,
    } else {
    }
    %c0 = arith.constant 0 : index
    %c0_1 = arith.constant 0 : index
    %3 = vector.load %arg3[%c0, %c0_1] : memref<16x32xf32, #tpu.memory_space<vmem>>, vector<16x32xf32>
    %cst = arith.constant dense<0.000000e+00> : vector<16xf32>
    %4 = vector.multi_reduction <add>, %3, %cst [1] : vector<16x32xf32> to vector<16xf32>
    %5 = vector.shape_cast %4 : vector<16xf32> to vector<16x1xf32>
    %cst_2 = arith.constant 3.200000e+01 : f32
    %6 = vector.broadcast %cst_2 : f32 to vector<16x1xf32>
    %7 = arith.divf %5, %6 : vector<16x1xf32>
    %8 = vector.broadcast %7 : vector<16x1xf32> to vector<16x32xf32>
    %9 = arith.subf %3, %8 : vector<16x32xf32>
    %10 = arith.mulf %9, %9 : vector<16x32xf32>
    %cst_3 = arith.constant dense<0.000000e+00> : vector<16xf32>
    %11 = vector.multi_reduction <add>, %10, %cst_3 [1] : vector<16x32xf32> to vector<16xf32>
    %12 = vector.shape_cast %11 : vector<16xf32> to vector<16x1xf32>
    %cst_4 = arith.constant 3.200000e+01 : f32
    %13 = vector.broadcast %cst_4 : f32 to vector<16x1xf32>
    %14 = arith.divf %12, %13 : vector<16x1xf32>
    %cst_5 = arith.constant 9.99999974E-6 : f32
    %15 = vector.broadcast %cst_5 : f32 to vector<16x1xf32>
    %16 = arith.addf %14, %15 : vector<16x1xf32>
    %17 = math.rsqrt %16 : vector<16x1xf32>
    %18 = vector.broadcast %17 : vector<16x1xf32> to vector<16x32xf32>
    %19 = arith.mulf %9, %18 : vector<16x32xf32>
    %c0_6 = arith.constant 0 : index
    %c0_7 = arith.constant 0 : index
    %20 = vector.load %arg4[%c0_6, %c0_7] : memref<1x32xf32, #tpu.memory_space<vmem>>, vector<1x32xf32>
    %21 = vector.broadcast %20 : vector<1x32xf32> to vector<16x32xf32>
    %22 = arith.mulf %19, %21 : vector<16x32xf32>
    %c0_8 = arith.constant 0 : index
    %c0_9 = arith.constant 0 : index
    %23 = vector.load %arg5[%c0_8, %c0_9] : memref<1x32xf32, #tpu.memory_space<vmem>>, vector<1x32xf32>
    %24 = vector.broadcast %23 : vector<1x32xf32> to vector<16x32xf32>
    %25 = arith.addf %22, %24 : vector<16x32xf32>
    %c0_10 = arith.constant 0 : index
    %c0_11 = arith.constant 0 : index
    %26 = vector.load %arg9[%c0_10, %c0_11] : memref<16x96xf32, #tpu.memory_space<vmem>>, vector<16x96xf32>
    %27 = arith.truncf %25 : vector<16x32xf32> to vector<16x32xbf16>
    %c0_12 = arith.constant 0 : index
    %c0_13 = arith.constant 0 : index
    %28 = vector.load %arg6[%c0_12, %c0_13] : memref<32x96xbf16, #tpu.memory_space<vmem>>, vector<32x96xbf16>
    %cst_14 = arith.constant dense<0.000000e+00> : vector<16x96xf32>
    %29 = tpu.matmul %27, %28, %cst_14 {dimension_numbers = #tpu.dot_dimension_numbers<[1], [0], [0], [1], [0, 0, 1, 1], [], []>} : vector<16x32xbf16>, vector<32x96xbf16>, vector<16x96xf32> -> vector<16x96xf32>
    %30 = arith.addf %26, %29 : vector<16x96xf32>
    %c0_15 = arith.constant 0 : index
    %c0_16 = arith.constant 0 : index
    %31 = vector.load %arg9[%c0_15, %c0_16] : memref<16x96xf32, #tpu.memory_space<vmem>>, vector<16x96xf32>
    tpu.vector_store %arg9[%c0_15, %c0_16], %30 {strides = array<i32>} : memref<16x96xf32, #tpu.memory_space<vmem>>, vector<16x96xf32>,
    %c0_i32_17 = arith.constant 0 : i32
    %32 = arith.cmpi eq, %arg2, %c0_i32_17 : i32
    %33 = arith.extui %32 : i1 to i32
    %c0_i32_18 = arith.constant 0 : i32
    %34 = arith.cmpi ne, %33, %c0_i32_18 : i32
    scf.if %34 {
      %c0_19 = arith.constant 0 : index
      %c0_20 = arith.constant 0 : index
      %35 = vector.load %arg9[%c0_19, %c0_20] : memref<16x96xf32, #tpu.memory_space<vmem>>, vector<16x96xf32>
      %c0_21 = arith.constant 0 : index
      %c0_22 = arith.constant 0 : index
      %36 = vector.load %arg7[%c0_21, %c0_22] : memref<1x96xf32, #tpu.memory_space<vmem>>, vector<1x96xf32>
      %37 = vector.broadcast %36 : vector<1x96xf32> to vector<16x96xf32>
      %38 = arith.addf %35, %37 : vector<16x96xf32>
      %39 = arith.truncf %38 : vector<16x96xf32> to vector<16x96xbf16>
      %c0_23 = arith.constant 0 : index
      %c0_24 = arith.constant 0 : index
      %40 = vector.load %arg8[%c0_23, %c0_24] : memref<16x96xbf16, #tpu.memory_space<vmem>>, vector<16x96xbf16>
      tpu.vector_store %arg8[%c0_23, %c0_24], %39 {strides = array<i32>} : memref<16x96xbf16, #tpu.memory_space<vmem>>, vector<16x96xbf16>,
    } else {
    }
    return
  }
  func.func @transform_0(%arg0: i32, %arg1: i32, %arg2: i32) -> (i32, i32) {
    %c0_i32 = arith.constant 0 : i32
    return %arg0, %arg2 : i32, i32
  }
  func.func @transform_1(%arg0: i32, %arg1: i32, %arg2: i32) -> (i32, i32) {
    %c0_i32 = arith.constant 0 : i32
    %c0_i32_0 = arith.constant 0 : i32
    %c0_i32_1 = arith.constant 0 : i32
    return %c0_i32, %c0_i32_0 : i32, i32
  }
  func.func @transform_2(%arg0: i32, %arg1: i32, %arg2: i32) -> (i32, i32) {
    %c0_i32 = arith.constant 0 : i32
    %c0_i32_0 = arith.constant 0 : i32
    %c0_i32_1 = arith.constant 0 : i32
    return %c0_i32, %c0_i32_0 : i32, i32
  }
  func.func @transform_3(%arg0: i32, %arg1: i32, %arg2: i32) -> (i32, i32) {
    %c0_i32 = arith.constant 0 : i32
    return %arg2, %arg1 : i32, i32
  }
  func.func @transform_4(%arg0: i32, %arg1: i32, %arg2: i32) -> (i32, i32) {
    %c0_i32 = arith.constant 0 : i32
    %c0_i32_0 = arith.constant 0 : i32
    return %c0_i32, %arg1 : i32, i32
  }
  func.func @transform_5(%arg0: i32, %arg1: i32, %arg2: i32) -> (i32, i32) {
    %c0_i32 = arith.constant 0 : i32
    return %arg0, %arg1 : i32, i32
  }
}

module attributes {stable_mosaic.version = 11 : i64} {
  func.func @_flash_attn_kernel(%arg0: i32, %arg1: i32, %arg2: i32, %arg3: memref<1x1x4x8x8xbf16, #tpu.memory_space<vmem>>, %arg4: memref<1x1x4x8x8xbf16, #tpu.memory_space<vmem>>, %arg5: memref<1x1x4x8x8xbf16, #tpu.memory_space<vmem>>, %arg6: memref<1x4x8x8xbf16, #tpu.memory_space<vmem>>, %arg7: memref<4x8x1xf32, #tpu.memory_space<vmem>>, %arg8: memref<4x8x1xf32, #tpu.memory_space<vmem>>, %arg9: memref<4x8x8xf32, #tpu.memory_space<vmem>>) attributes {dimension_semantics = [#tpu.dimension_semantics<parallel>, #tpu.dimension_semantics<parallel>, #tpu.dimension_semantics<arbitrary>], iteration_bounds = array<i64: 2, 1, 1>, scalar_prefetch = 0 : i64, scratch_operands = 3 : i64, tpu.core_type = #tpu.core_type<tc>, window_params = [{transform_indices = @transform_0, window_bounds = array<i64: 1, 1, 4, 8, 8>}, {transform_indices = @transform_1, window_bounds = array<i64: 1, 1, 4, 8, 8>}, {transform_indices = @transform_2, window_bounds = array<i64: 1, 1, 4, 8, 8>}, {transform_indices = @transform_3, window_bounds = array<i64: 1, 4, 8, 8>}]} {
    %c0_i32 = arith.constant 0 : i32
    %0 = arith.cmpi eq, %arg2, %c0_i32 : i32
    %1 = arith.extui %0 : i1 to i32
    %c0_i32_0 = arith.constant 0 : i32
    %2 = arith.cmpi ne, %1, %c0_i32_0 : i32
    scf.if %2 {
      %cst = arith.constant -1.000000e+30 : f32
      %9 = vector.broadcast %cst : f32 to vector<4x8x1xf32>
      %c0 = arith.constant 0 : index
      %c0_3 = arith.constant 0 : index
      %c0_4 = arith.constant 0 : index
      %10 = vector.load %arg7[%c0, %c0_3, %c0_4] : memref<4x8x1xf32, #tpu.memory_space<vmem>>, vector<4x8x1xf32>
      tpu.vector_store %arg7[%c0, %c0_3, %c0_4], %9 {strides = array<i32>} : memref<4x8x1xf32, #tpu.memory_space<vmem>>, vector<4x8x1xf32>,
      %cst_5 = arith.constant 0.000000e+00 : f32
      %11 = vector.broadcast %cst_5 : f32 to vector<4x8x1xf32>
      %c0_6 = arith.constant 0 : index
      %c0_7 = arith.constant 0 : index
      %c0_8 = arith.constant 0 : index
      %12 = vector.load %arg8[%c0_6, %c0_7, %c0_8] : memref<4x8x1xf32, #tpu.memory_space<vmem>>, vector<4x8x1xf32>
      tpu.vector_store %arg8[%c0_6, %c0_7, %c0_8], %11 {strides = array<i32>} : memref<4x8x1xf32, #tpu.memory_space<vmem>>, vector<4x8x1xf32>,
      %cst_9 = arith.constant 0.000000e+00 : f32
      %13 = vector.broadcast %cst_9 : f32 to vector<4x8x8xf32>
      %c0_10 = arith.constant 0 : index
      %c0_11 = arith.constant 0 : index
      %c0_12 = arith.constant 0 : index
      %14 = vector.load %arg9[%c0_10, %c0_11, %c0_12] : memref<4x8x8xf32, #tpu.memory_space<vmem>>, vector<4x8x8xf32>
      tpu.vector_store %arg9[%c0_10, %c0_11, %c0_12], %13 {strides = array<i32>} : memref<4x8x8xf32, #tpu.memory_space<vmem>>, vector<4x8x8xf32>,
    } else {
    }
    %3 = arith.cmpi sle, %arg2, %arg1 : i32
    %4 = arith.extui %3 : i1 to i32
    %c0_i32_1 = arith.constant 0 : i32
    %5 = arith.cmpi ne, %4, %c0_i32_1 : i32
    scf.if %5 {
      %c8_i32 = arith.constant 8 : i32
      %9 = arith.muli %arg1, %c8_i32 : i32
      %10 = tpu.iota {dimensions = array<i32: 0>} : vector<8x8xi32>
      %11 = vector.broadcast %9 : i32 to vector<8x8xi32>
      %12 = arith.addi %11, %10 : vector<8x8xi32>
      %c8_i32_3 = arith.constant 8 : i32
      %13 = arith.muli %arg2, %c8_i32_3 : i32
      %14 = tpu.iota {dimensions = array<i32: 1>} : vector<8x8xi32>
      %15 = vector.broadcast %13 : i32 to vector<8x8xi32>
      %16 = arith.addi %15, %14 : vector<8x8xi32>
      %17 = arith.cmpi sle, %16, %12 : vector<8x8xi32>
      %18 = vector.shape_cast %17 : vector<8x8xi1> to vector<1x8x8xi1>
      %c0 = arith.constant 0 : index
      %c0_4 = arith.constant 0 : index
      %c0_5 = arith.constant 0 : index
      %c0_6 = arith.constant 0 : index
      %c0_7 = arith.constant 0 : index
      %19 = vector.load %arg3[%c0, %c0_4, %c0_5, %c0_6, %c0_7] : memref<1x1x4x8x8xbf16, #tpu.memory_space<vmem>>, vector<1x1x4x8x8xbf16>
      %20 = vector.shape_cast %19 : vector<1x1x4x8x8xbf16> to vector<4x8x8xbf16>
      %21 = arith.extf %20 : vector<4x8x8xbf16> to vector<4x8x8xf32>
      %cst = arith.constant 0.353553385 : f32
      %22 = vector.broadcast %cst : f32 to vector<4x8x8xf32>
      %23 = arith.mulf %21, %22 : vector<4x8x8xf32>
      %24 = arith.truncf %23 : vector<4x8x8xf32> to vector<4x8x8xbf16>
      %c0_8 = arith.constant 0 : index
      %c0_9 = arith.constant 0 : index
      %c0_10 = arith.constant 0 : index
      %c0_11 = arith.constant 0 : index
      %c0_12 = arith.constant 0 : index
      %25 = vector.load %arg4[%c0_8, %c0_9, %c0_10, %c0_11, %c0_12] : memref<1x1x4x8x8xbf16, #tpu.memory_space<vmem>>, vector<1x1x4x8x8xbf16>
      %26 = vector.shape_cast %25 : vector<1x1x4x8x8xbf16> to vector<4x8x8xbf16>
      %c0_13 = arith.constant 0 : index
      %c0_14 = arith.constant 0 : index
      %c0_15 = arith.constant 0 : index
      %c0_16 = arith.constant 0 : index
      %c0_17 = arith.constant 0 : index
      %27 = vector.load %arg5[%c0_13, %c0_14, %c0_15, %c0_16, %c0_17] : memref<1x1x4x8x8xbf16, #tpu.memory_space<vmem>>, vector<1x1x4x8x8xbf16>
      %28 = vector.shape_cast %27 : vector<1x1x4x8x8xbf16> to vector<4x8x8xbf16>
      "tpu.trace_start"() <{level = 10 : i32, message = "hqd,hkd->hqk"}> : () -> ()
      %cst_18 = arith.constant dense<0.000000e+00> : vector<4x8x8xf32>
      %29 = tpu.matmul %24, %26, %cst_18 {dimension_numbers = #tpu.dot_dimension_numbers<[2], [2], [1], [1], [0, 0, 0, 1, 1, 1], [0], [0]>} : vector<4x8x8xbf16>, vector<4x8x8xbf16>, vector<4x8x8xf32> -> vector<4x8x8xf32>
      %cst_19 = arith.constant -1.000000e+30 : f32
      "tpu.trace_stop"() : () -> ()
      %30 = vector.shape_cast %18 : vector<1x8x8xi1> to vector<1x8x8xi1>
      %31 = vector.broadcast %30 : vector<1x8x8xi1> to vector<4x8x8xi1>
      %32 = vector.broadcast %cst_19 : f32 to vector<4x8x8xf32>
      %33 = arith.select %31, %29, %32 : vector<4x8x8xi1>, vector<4x8x8xf32>
      %c0_20 = arith.constant 0 : index
      %c0_21 = arith.constant 0 : index
      %c0_22 = arith.constant 0 : index
      %34 = vector.load %arg7[%c0_20, %c0_21, %c0_22] : memref<4x8x1xf32, #tpu.memory_space<vmem>>, vector<4x8x1xf32>
      %cst_23 = arith.constant dense<0xFF800000> : vector<4x8xf32>
      %35 = vector.multi_reduction <maximumf>, %33, %cst_23 [2] : vector<4x8x8xf32> to vector<4x8xf32>
      %36 = vector.shape_cast %35 : vector<4x8xf32> to vector<4x8x1xf32>
      %37 = arith.maximumf %34, %36 : vector<4x8x1xf32>
      %38 = arith.subf %34, %37 : vector<4x8x1xf32>
      %39 = math.exp %38 : vector<4x8x1xf32>
      %40 = vector.broadcast %37 : vector<4x8x1xf32> to vector<4x8x8xf32>
      %41 = arith.subf %33, %40 : vector<4x8x8xf32>
      %42 = math.exp %41 : vector<4x8x8xf32>
      %c0_24 = arith.constant 0 : index
      %c0_25 = arith.constant 0 : index
      %c0_26 = arith.constant 0 : index
      %43 = vector.load %arg8[%c0_24, %c0_25, %c0_26] : memref<4x8x1xf32, #tpu.memory_space<vmem>>, vector<4x8x1xf32>
      %44 = arith.mulf %39, %43 : vector<4x8x1xf32>
      %cst_27 = arith.constant dense<0.000000e+00> : vector<4x8xf32>
      %45 = vector.multi_reduction <add>, %42, %cst_27 [2] : vector<4x8x8xf32> to vector<4x8xf32>
      %46 = vector.shape_cast %45 : vector<4x8xf32> to vector<4x8x1xf32>
      %47 = arith.addf %44, %46 : vector<4x8x1xf32>
      %c0_28 = arith.constant 0 : index
      %c0_29 = arith.constant 0 : index
      %c0_30 = arith.constant 0 : index
      %48 = vector.load %arg8[%c0_28, %c0_29, %c0_30] : memref<4x8x1xf32, #tpu.memory_space<vmem>>, vector<4x8x1xf32>
      tpu.vector_store %arg8[%c0_28, %c0_29, %c0_30], %47 {strides = array<i32>} : memref<4x8x1xf32, #tpu.memory_space<vmem>>, vector<4x8x1xf32>,
      %c0_31 = arith.constant 0 : index
      %c0_32 = arith.constant 0 : index
      %c0_33 = arith.constant 0 : index
      %49 = vector.load %arg9[%c0_31, %c0_32, %c0_33] : memref<4x8x8xf32, #tpu.memory_space<vmem>>, vector<4x8x8xf32>
      %50 = vector.broadcast %39 : vector<4x8x1xf32> to vector<4x8x8xf32>
      %51 = arith.mulf %50, %49 : vector<4x8x8xf32>
      %52 = arith.truncf %42 : vector<4x8x8xf32> to vector<4x8x8xbf16>
      "tpu.trace_start"() <{level = 10 : i32, message = "hqk,hkd->hqd"}> : () -> ()
      %cst_34 = arith.constant dense<0.000000e+00> : vector<4x8x8xf32>
      %53 = tpu.matmul %52, %28, %cst_34 {dimension_numbers = #tpu.dot_dimension_numbers<[2], [1], [1], [2], [0, 0, 0, 1, 1, 2], [0], [0]>} : vector<4x8x8xbf16>, vector<4x8x8xbf16>, vector<4x8x8xf32> -> vector<4x8x8xf32>
      "tpu.trace_stop"() : () -> ()
      %54 = arith.addf %51, %53 : vector<4x8x8xf32>
      %c0_35 = arith.constant 0 : index
      %c0_36 = arith.constant 0 : index
      %c0_37 = arith.constant 0 : index
      %55 = vector.load %arg9[%c0_35, %c0_36, %c0_37] : memref<4x8x8xf32, #tpu.memory_space<vmem>>, vector<4x8x8xf32>
      tpu.vector_store %arg9[%c0_35, %c0_36, %c0_37], %54 {strides = array<i32>} : memref<4x8x8xf32, #tpu.memory_space<vmem>>, vector<4x8x8xf32>,
      %c0_38 = arith.constant 0 : index
      %c0_39 = arith.constant 0 : index
      %c0_40 = arith.constant 0 : index
      %56 = vector.load %arg7[%c0_38, %c0_39, %c0_40] : memref<4x8x1xf32, #tpu.memory_space<vmem>>, vector<4x8x1xf32>
      tpu.vector_store %arg7[%c0_38, %c0_39, %c0_40], %37 {strides = array<i32>} : memref<4x8x1xf32, #tpu.memory_space<vmem>>, vector<4x8x1xf32>,
    } else {
    }
    %6 = arith.cmpi eq, %arg2, %arg1 : i32
    %7 = arith.extui %6 : i1 to i32
    %c0_i32_2 = arith.constant 0 : i32
    %8 = arith.cmpi ne, %7, %c0_i32_2 : i32
    scf.if %8 {
      %c0 = arith.constant 0 : index
      %c0_3 = arith.constant 0 : index
      %c0_4 = arith.constant 0 : index
      %9 = vector.load %arg8[%c0, %c0_3, %c0_4] : memref<4x8x1xf32, #tpu.memory_space<vmem>>, vector<4x8x1xf32>
      %10 = tpu.reciprocal %9 {approx = true} : vector<4x8x1xf32> -> vector<4x8x1xf32>
      %c0_5 = arith.constant 0 : index
      %c0_6 = arith.constant 0 : index
      %c0_7 = arith.constant 0 : index
      %11 = vector.load %arg9[%c0_5, %c0_6, %c0_7] : memref<4x8x8xf32, #tpu.memory_space<vmem>>, vector<4x8x8xf32>
      %12 = vector.broadcast %10 : vector<4x8x1xf32> to vector<4x8x8xf32>
      %13 = arith.mulf %11, %12 : vector<4x8x8xf32>
      %14 = arith.truncf %13 : vector<4x8x8xf32> to vector<4x8x8xbf16>
      %c0_8 = arith.constant 0 : index
      %c0_9 = arith.constant 0 : index
      %c0_10 = arith.constant 0 : index
      %c0_11 = arith.constant 0 : index
      %15 = vector.load %arg6[%c0_8, %c0_9, %c0_10, %c0_11] : memref<1x4x8x8xbf16, #tpu.memory_space<vmem>>, vector<1x4x8x8xbf16>
      %16 = vector.shape_cast %15 : vector<1x4x8x8xbf16> to vector<4x8x8xbf16>
      %17 = vector.shape_cast %14 : vector<4x8x8xbf16> to vector<1x4x8x8xbf16>
      tpu.vector_store %arg6[%c0_8, %c0_9, %c0_10, %c0_11], %17 {strides = array<i32>} : memref<1x4x8x8xbf16, #tpu.memory_space<vmem>>, vector<1x4x8x8xbf16>,
    } else {
    }
    return
  }
  func.func @transform_0(%arg0: i32, %arg1: i32, %arg2: i32) -> (i32, i32, i32, i32, i32) {
    %c0_i32 = arith.constant 0 : i32
    %c0_i32_0 = arith.constant 0 : i32
    %c0_i32_1 = arith.constant 0 : i32
    %c0_i32_2 = arith.constant 0 : i32
    return %c0_i32, %arg0, %c0_i32_0, %arg1, %c0_i32_1 : i32, i32, i32, i32, i32
  }
  func.func @transform_1(%arg0: i32, %arg1: i32, %arg2: i32) -> (i32, i32, i32, i32, i32) {
    %0 = arith.minsi %arg2, %arg1 : i32
    %c1_i32 = arith.constant 1 : i32
    %c0_i32 = arith.constant 0 : i32
    %c0_i32_0 = arith.constant 0 : i32
    %c0_i32_1 = arith.constant 0 : i32
    return %c1_i32, %arg0, %c0_i32, %0, %c0_i32_0 : i32, i32, i32, i32, i32
  }
  func.func @transform_2(%arg0: i32, %arg1: i32, %arg2: i32) -> (i32, i32, i32, i32, i32) {
    %0 = arith.minsi %arg2, %arg1 : i32
    %c2_i32 = arith.constant 2 : i32
    %c0_i32 = arith.constant 0 : i32
    %c0_i32_0 = arith.constant 0 : i32
    %c0_i32_1 = arith.constant 0 : i32
    return %c2_i32, %arg0, %c0_i32, %0, %c0_i32_0 : i32, i32, i32, i32, i32
  }
  func.func @transform_3(%arg0: i32, %arg1: i32, %arg2: i32) -> (i32, i32, i32, i32) {
    %c0_i32 = arith.constant 0 : i32
    %c0_i32_0 = arith.constant 0 : i32
    %c0_i32_1 = arith.constant 0 : i32
    return %arg0, %c0_i32, %arg1, %c0_i32_0 : i32, i32, i32, i32
  }
}

module attributes {stable_mosaic.version = 11 : i64} {
  func.func @_linear_kernel(%arg0: i32, %arg1: i32, %arg2: i32, %arg3: memref<16x32xbf16, #tpu.memory_space<vmem>>, %arg4: memref<32x32xbf16, #tpu.memory_space<vmem>>, %arg5: memref<1x32xf32, #tpu.memory_space<vmem>>, %arg6: memref<16x32xf32, #tpu.memory_space<vmem>>, %arg7: memref<16x32xf32, #tpu.memory_space<vmem>>, %arg8: memref<16x32xf32, #tpu.memory_space<vmem>>) attributes {dimension_semantics = [#tpu.dimension_semantics<parallel>, #tpu.dimension_semantics<parallel>, #tpu.dimension_semantics<arbitrary>], iteration_bounds = array<i64: 1, 1, 1>, scalar_prefetch = 0 : i64, scratch_operands = 1 : i64, tpu.core_type = #tpu.core_type<tc>, window_params = [{transform_indices = @transform_0, window_bounds = array<i64: 16, 32>}, {transform_indices = @transform_1, window_bounds = array<i64: 32, 32>}, {transform_indices = @transform_2, window_bounds = array<i64: 1, 32>}, {transform_indices = @transform_3, window_bounds = array<i64: 16, 32>}, {transform_indices = @transform_4, window_bounds = array<i64: 16, 32>}]} {
    %c0_i32 = arith.constant 0 : i32
    %0 = arith.cmpi eq, %arg2, %c0_i32 : i32
    %1 = arith.extui %0 : i1 to i32
    %c0_i32_0 = arith.constant 0 : i32
    %2 = arith.cmpi ne, %1, %c0_i32_0 : i32
    scf.if %2 {
      %cst_10 = arith.constant 0.000000e+00 : f32
      %14 = vector.broadcast %cst_10 : f32 to vector<16x32xf32>
      %c0_11 = arith.constant 0 : index
      %c0_12 = arith.constant 0 : index
      %15 = vector.load %arg8[%c0_11, %c0_12] : memref<16x32xf32, #tpu.memory_space<vmem>>, vector<16x32xf32>
      tpu.vector_store %arg8[%c0_11, %c0_12], %14 {strides = array<i32>} : memref<16x32xf32, #tpu.memory_space<vmem>>, vector<16x32xf32>,
    } else {
    }
    %c0 = arith.constant 0 : index
    %c0_1 = arith.constant 0 : index
    %3 = vector.load %arg3[%c0, %c0_1] : memref<16x32xbf16, #tpu.memory_space<vmem>>, vector<16x32xbf16>
    %4 = arith.extf %3 : vector<16x32xbf16> to vector<16x32xf32>
    %c0_2 = arith.constant 0 : index
    %c0_3 = arith.constant 0 : index
    %5 = vector.load %arg8[%c0_2, %c0_3] : memref<16x32xf32, #tpu.memory_space<vmem>>, vector<16x32xf32>
    %6 = arith.truncf %4 : vector<16x32xf32> to vector<16x32xbf16>
    %c0_4 = arith.constant 0 : index
    %c0_5 = arith.constant 0 : index
    %7 = vector.load %arg4[%c0_4, %c0_5] : memref<32x32xbf16, #tpu.memory_space<vmem>>, vector<32x32xbf16>
    %cst = arith.constant dense<0.000000e+00> : vector<16x32xf32>
    %8 = tpu.matmul %6, %7, %cst {dimension_numbers = #tpu.dot_dimension_numbers<[1], [0], [0], [1], [0, 0, 1, 1], [], []>} : vector<16x32xbf16>, vector<32x32xbf16>, vector<16x32xf32> -> vector<16x32xf32>
    %9 = arith.addf %5, %8 : vector<16x32xf32>
    %c0_6 = arith.constant 0 : index
    %c0_7 = arith.constant 0 : index
    %10 = vector.load %arg8[%c0_6, %c0_7] : memref<16x32xf32, #tpu.memory_space<vmem>>, vector<16x32xf32>
    tpu.vector_store %arg8[%c0_6, %c0_7], %9 {strides = array<i32>} : memref<16x32xf32, #tpu.memory_space<vmem>>, vector<16x32xf32>,
    %c0_i32_8 = arith.constant 0 : i32
    %11 = arith.cmpi eq, %arg2, %c0_i32_8 : i32
    %12 = arith.extui %11 : i1 to i32
    %c0_i32_9 = arith.constant 0 : i32
    %13 = arith.cmpi ne, %12, %c0_i32_9 : i32
    scf.if %13 {
      %c0_10 = arith.constant 0 : index
      %c0_11 = arith.constant 0 : index
      %14 = vector.load %arg8[%c0_10, %c0_11] : memref<16x32xf32, #tpu.memory_space<vmem>>, vector<16x32xf32>
      %c0_12 = arith.constant 0 : index
      %c0_13 = arith.constant 0 : index
      %15 = vector.load %arg5[%c0_12, %c0_13] : memref<1x32xf32, #tpu.memory_space<vmem>>, vector<1x32xf32>
      %16 = vector.broadcast %15 : vector<1x32xf32> to vector<16x32xf32>
      %17 = arith.addf %14, %16 : vector<16x32xf32>
      %c0_14 = arith.constant 0 : index
      %c0_15 = arith.constant 0 : index
      %18 = vector.load %arg6[%c0_14, %c0_15] : memref<16x32xf32, #tpu.memory_space<vmem>>, vector<16x32xf32>
      %19 = arith.addf %17, %18 : vector<16x32xf32>
      %c0_16 = arith.constant 0 : index
      %c0_17 = arith.constant 0 : index
      %20 = vector.load %arg7[%c0_16, %c0_17] : memref<16x32xf32, #tpu.memory_space<vmem>>, vector<16x32xf32>
      tpu.vector_store %arg7[%c0_16, %c0_17], %19 {strides = array<i32>} : memref<16x32xf32, #tpu.memory_space<vmem>>, vector<16x32xf32>,
    } else {
    }
    return
  }
  func.func @transform_0(%arg0: i32, %arg1: i32, %arg2: i32) -> (i32, i32) {
    %c0_i32 = arith.constant 0 : i32
    return %arg0, %arg2 : i32, i32
  }
  func.func @transform_1(%arg0: i32, %arg1: i32, %arg2: i32) -> (i32, i32) {
    %c0_i32 = arith.constant 0 : i32
    return %arg2, %arg1 : i32, i32
  }
  func.func @transform_2(%arg0: i32, %arg1: i32, %arg2: i32) -> (i32, i32) {
    %c0_i32 = arith.constant 0 : i32
    %c0_i32_0 = arith.constant 0 : i32
    return %c0_i32, %arg1 : i32, i32
  }
  func.func @transform_3(%arg0: i32, %arg1: i32, %arg2: i32) -> (i32, i32) {
    %c0_i32 = arith.constant 0 : i32
    return %arg0, %arg1 : i32, i32
  }
  func.func @transform_4(%arg0: i32, %arg1: i32, %arg2: i32) -> (i32, i32) {
    %c0_i32 = arith.constant 0 : i32
    return %arg0, %arg1 : i32, i32
  }
}

module attributes {stable_mosaic.version = 11 : i64} {
  func.func @_linear_kernel(%arg0: i32, %arg1: i32, %arg2: i32, %arg3: memref<16x32xf32, #tpu.memory_space<vmem>>, %arg4: memref<1x32xf32, #tpu.memory_space<vmem>>, %arg5: memref<1x32xf32, #tpu.memory_space<vmem>>, %arg6: memref<32x128xbf16, #tpu.memory_space<vmem>>, %arg7: memref<1x128xf32, #tpu.memory_space<vmem>>, %arg8: memref<16x128xbf16, #tpu.memory_space<vmem>>, %arg9: memref<16x128xf32, #tpu.memory_space<vmem>>) attributes {dimension_semantics = [#tpu.dimension_semantics<parallel>, #tpu.dimension_semantics<parallel>, #tpu.dimension_semantics<arbitrary>], iteration_bounds = array<i64: 1, 1, 1>, scalar_prefetch = 0 : i64, scratch_operands = 1 : i64, tpu.core_type = #tpu.core_type<tc>, window_params = [{transform_indices = @transform_0, window_bounds = array<i64: 16, 32>}, {pipeline_mode = #tpu.pipeline_mode<synchronous>, transform_indices = @transform_1, window_bounds = array<i64: 1, 32>}, {pipeline_mode = #tpu.pipeline_mode<synchronous>, transform_indices = @transform_2, window_bounds = array<i64: 1, 32>}, {transform_indices = @transform_3, window_bounds = array<i64: 32, 128>}, {transform_indices = @transform_4, window_bounds = array<i64: 1, 128>}, {transform_indices = @transform_5, window_bounds = array<i64: 16, 128>}]} {
    %c0_i32 = arith.constant 0 : i32
    %0 = arith.cmpi eq, %arg2, %c0_i32 : i32
    %1 = arith.extui %0 : i1 to i32
    %c0_i32_0 = arith.constant 0 : i32
    %2 = arith.cmpi ne, %1, %c0_i32_0 : i32
    scf.if %2 {
      %cst_19 = arith.constant 0.000000e+00 : f32
      %35 = vector.broadcast %cst_19 : f32 to vector<16x128xf32>
      %c0_20 = arith.constant 0 : index
      %c0_21 = arith.constant 0 : index
      %36 = vector.load %arg9[%c0_20, %c0_21] : memref<16x128xf32, #tpu.memory_space<vmem>>, vector<16x128xf32>
      tpu.vector_store %arg9[%c0_20, %c0_21], %35 {strides = array<i32>} : memref<16x128xf32, #tpu.memory_space<vmem>>, vector<16x128xf32>,
    } else {
    }
    %c0 = arith.constant 0 : index
    %c0_1 = arith.constant 0 : index
    %3 = vector.load %arg3[%c0, %c0_1] : memref<16x32xf32, #tpu.memory_space<vmem>>, vector<16x32xf32>
    %cst = arith.constant dense<0.000000e+00> : vector<16xf32>
    %4 = vector.multi_reduction <add>, %3, %cst [1] : vector<16x32xf32> to vector<16xf32>
    %5 = vector.shape_cast %4 : vector<16xf32> to vector<16x1xf32>
    %cst_2 = arith.constant 3.200000e+01 : f32
    %6 = vector.broadcast %cst_2 : f32 to vector<16x1xf32>
    %7 = arith.divf %5, %6 : vector<16x1xf32>
    %8 = vector.broadcast %7 : vector<16x1xf32> to vector<16x32xf32>
    %9 = arith.subf %3, %8 : vector<16x32xf32>
    %10 = arith.mulf %9, %9 : vector<16x32xf32>
    %cst_3 = arith.constant dense<0.000000e+00> : vector<16xf32>
    %11 = vector.multi_reduction <add>, %10, %cst_3 [1] : vector<16x32xf32> to vector<16xf32>
    %12 = vector.shape_cast %11 : vector<16xf32> to vector<16x1xf32>
    %cst_4 = arith.constant 3.200000e+01 : f32
    %13 = vector.broadcast %cst_4 : f32 to vector<16x1xf32>
    %14 = arith.divf %12, %13 : vector<16x1xf32>
    %cst_5 = arith.constant 9.99999974E-6 : f32
    %15 = vector.broadcast %cst_5 : f32 to vector<16x1xf32>
    %16 = arith.addf %14, %15 : vector<16x1xf32>
    %17 = math.rsqrt %16 : vector<16x1xf32>
    %18 = vector.broadcast %17 : vector<16x1xf32> to vector<16x32xf32>
    %19 = arith.mulf %9, %18 : vector<16x32xf32>
    %c0_6 = arith.constant 0 : index
    %c0_7 = arith.constant 0 : index
    %20 = vector.load %arg4[%c0_6, %c0_7] : memref<1x32xf32, #tpu.memory_space<vmem>>, vector<1x32xf32>
    %21 = vector.broadcast %20 : vector<1x32xf32> to vector<16x32xf32>
    %22 = arith.mulf %19, %21 : vector<16x32xf32>
    %c0_8 = arith.constant 0 : index
    %c0_9 = arith.constant 0 : index
    %23 = vector.load %arg5[%c0_8, %c0_9] : memref<1x32xf32, #tpu.memory_space<vmem>>, vector<1x32xf32>
    %24 = vector.broadcast %23 : vector<1x32xf32> to vector<16x32xf32>
    %25 = arith.addf %22, %24 : vector<16x32xf32>
    %c0_10 = arith.constant 0 : index
    %c0_11 = arith.constant 0 : index
    %26 = vector.load %arg9[%c0_10, %c0_11] : memref<16x128xf32, #tpu.memory_space<vmem>>, vector<16x128xf32>
    %27 = arith.truncf %25 : vector<16x32xf32> to vector<16x32xbf16>
    %c0_12 = arith.constant 0 : index
    %c0_13 = arith.constant 0 : index
    %28 = vector.load %arg6[%c0_12, %c0_13] : memref<32x128xbf16, #tpu.memory_space<vmem>>, vector<32x128xbf16>
    %cst_14 = arith.constant dense<0.000000e+00> : vector<16x128xf32>
    %29 = tpu.matmul %27, %28, %cst_14 {dimension_numbers = #tpu.dot_dimension_numbers<[1], [0], [0], [1], [0, 0, 1, 1], [], []>} : vector<16x32xbf16>, vector<32x128xbf16>, vector<16x128xf32> -> vector<16x128xf32>
    %30 = arith.addf %26, %29 : vector<16x128xf32>
    %c0_15 = arith.constant 0 : index
    %c0_16 = arith.constant 0 : index
    %31 = vector.load %arg9[%c0_15, %c0_16] : memref<16x128xf32, #tpu.memory_space<vmem>>, vector<16x128xf32>
    tpu.vector_store %arg9[%c0_15, %c0_16], %30 {strides = array<i32>} : memref<16x128xf32, #tpu.memory_space<vmem>>, vector<16x128xf32>,
    %c0_i32_17 = arith.constant 0 : i32
    %32 = arith.cmpi eq, %arg2, %c0_i32_17 : i32
    %33 = arith.extui %32 : i1 to i32
    %c0_i32_18 = arith.constant 0 : i32
    %34 = arith.cmpi ne, %33, %c0_i32_18 : i32
    scf.if %34 {
      %c0_19 = arith.constant 0 : index
      %c0_20 = arith.constant 0 : index
      %35 = vector.load %arg9[%c0_19, %c0_20] : memref<16x128xf32, #tpu.memory_space<vmem>>, vector<16x128xf32>
      %c0_21 = arith.constant 0 : index
      %c0_22 = arith.constant 0 : index
      %36 = vector.load %arg7[%c0_21, %c0_22] : memref<1x128xf32, #tpu.memory_space<vmem>>, vector<1x128xf32>
      %37 = vector.broadcast %36 : vector<1x128xf32> to vector<16x128xf32>
      %38 = arith.addf %35, %37 : vector<16x128xf32>
      %cst_23 = arith.constant 5.000000e-01 : f32
      %39 = vector.broadcast %cst_23 : f32 to vector<16x128xf32>
      %40 = arith.mulf %39, %38 : vector<16x128xf32>
      %cst_24 = arith.constant 0.707106769 : f32
      %41 = vector.broadcast %cst_24 : f32 to vector<16x128xf32>
      %42 = arith.mulf %38, %41 : vector<16x128xf32>
      %43 = math.erf %42 : vector<16x128xf32>
      %cst_25 = arith.constant 1.000000e+00 : f32
      %44 = vector.broadcast %cst_25 : f32 to vector<16x128xf32>
      %45 = arith.addf %44, %43 : vector<16x128xf32>
      %46 = arith.mulf %40, %45 : vector<16x128xf32>
      %47 = arith.truncf %46 : vector<16x128xf32> to vector<16x128xbf16>
      %c0_26 = arith.constant 0 : index
      %c0_27 = arith.constant 0 : index
      %48 = vector.load %arg8[%c0_26, %c0_27] : memref<16x128xbf16, #tpu.memory_space<vmem>>, vector<16x128xbf16>
      tpu.vector_store %arg8[%c0_26, %c0_27], %47 {strides = array<i32>} : memref<16x128xbf16, #tpu.memory_space<vmem>>, vector<16x128xbf16>,
    } else {
    }
    return
  }
  func.func @transform_0(%arg0: i32, %arg1: i32, %arg2: i32) -> (i32, i32) {
    %c0_i32 = arith.constant 0 : i32
    return %arg0, %arg2 : i32, i32
  }
  func.func @transform_1(%arg0: i32, %arg1: i32, %arg2: i32) -> (i32, i32) {
    %c0_i32 = arith.constant 0 : i32
    %c0_i32_0 = arith.constant 0 : i32
    %c0_i32_1 = arith.constant 0 : i32
    return %c0_i32, %c0_i32_0 : i32, i32
  }
  func.func @transform_2(%arg0: i32, %arg1: i32, %arg2: i32) -> (i32, i32) {
    %c0_i32 = arith.constant 0 : i32
    %c0_i32_0 = arith.constant 0 : i32
    %c0_i32_1 = arith.constant 0 : i32
    return %c0_i32, %c0_i32_0 : i32, i32
  }
  func.func @transform_3(%arg0: i32, %arg1: i32, %arg2: i32) -> (i32, i32) {
    %c0_i32 = arith.constant 0 : i32
    return %arg2, %arg1 : i32, i32
  }
  func.func @transform_4(%arg0: i32, %arg1: i32, %arg2: i32) -> (i32, i32) {
    %c0_i32 = arith.constant 0 : i32
    %c0_i32_0 = arith.constant 0 : i32
    return %c0_i32, %arg1 : i32, i32
  }
  func.func @transform_5(%arg0: i32, %arg1: i32, %arg2: i32) -> (i32, i32) {
    %c0_i32 = arith.constant 0 : i32
    return %arg0, %arg1 : i32, i32
  }
}

module attributes {stable_mosaic.version = 11 : i64} {
  func.func @_linear_kernel(%arg0: i32, %arg1: i32, %arg2: i32, %arg3: memref<16x128xbf16, #tpu.memory_space<vmem>>, %arg4: memref<128x32xbf16, #tpu.memory_space<vmem>>, %arg5: memref<1x32xf32, #tpu.memory_space<vmem>>, %arg6: memref<16x32xf32, #tpu.memory_space<vmem>>, %arg7: memref<16x32xf32, #tpu.memory_space<vmem>>, %arg8: memref<16x32xf32, #tpu.memory_space<vmem>>) attributes {dimension_semantics = [#tpu.dimension_semantics<parallel>, #tpu.dimension_semantics<parallel>, #tpu.dimension_semantics<arbitrary>], iteration_bounds = array<i64: 1, 1, 1>, scalar_prefetch = 0 : i64, scratch_operands = 1 : i64, tpu.core_type = #tpu.core_type<tc>, window_params = [{transform_indices = @transform_0, window_bounds = array<i64: 16, 128>}, {transform_indices = @transform_1, window_bounds = array<i64: 128, 32>}, {transform_indices = @transform_2, window_bounds = array<i64: 1, 32>}, {transform_indices = @transform_3, window_bounds = array<i64: 16, 32>}, {transform_indices = @transform_4, window_bounds = array<i64: 16, 32>}]} {
    %c0_i32 = arith.constant 0 : i32
    %0 = arith.cmpi eq, %arg2, %c0_i32 : i32
    %1 = arith.extui %0 : i1 to i32
    %c0_i32_0 = arith.constant 0 : i32
    %2 = arith.cmpi ne, %1, %c0_i32_0 : i32
    scf.if %2 {
      %cst_10 = arith.constant 0.000000e+00 : f32
      %14 = vector.broadcast %cst_10 : f32 to vector<16x32xf32>
      %c0_11 = arith.constant 0 : index
      %c0_12 = arith.constant 0 : index
      %15 = vector.load %arg8[%c0_11, %c0_12] : memref<16x32xf32, #tpu.memory_space<vmem>>, vector<16x32xf32>
      tpu.vector_store %arg8[%c0_11, %c0_12], %14 {strides = array<i32>} : memref<16x32xf32, #tpu.memory_space<vmem>>, vector<16x32xf32>,
    } else {
    }
    %c0 = arith.constant 0 : index
    %c0_1 = arith.constant 0 : index
    %3 = vector.load %arg3[%c0, %c0_1] : memref<16x128xbf16, #tpu.memory_space<vmem>>, vector<16x128xbf16>
    %4 = arith.extf %3 : vector<16x128xbf16> to vector<16x128xf32>
    %c0_2 = arith.constant 0 : index
    %c0_3 = arith.constant 0 : index
    %5 = vector.load %arg8[%c0_2, %c0_3] : memref<16x32xf32, #tpu.memory_space<vmem>>, vector<16x32xf32>
    %6 = arith.truncf %4 : vector<16x128xf32> to vector<16x128xbf16>
    %c0_4 = arith.constant 0 : index
    %c0_5 = arith.constant 0 : index
    %7 = vector.load %arg4[%c0_4, %c0_5] : memref<128x32xbf16, #tpu.memory_space<vmem>>, vector<128x32xbf16>
    %cst = arith.constant dense<0.000000e+00> : vector<16x32xf32>
    %8 = tpu.matmul %6, %7, %cst {dimension_numbers = #tpu.dot_dimension_numbers<[1], [0], [0], [1], [0, 0, 1, 1], [], []>} : vector<16x128xbf16>, vector<128x32xbf16>, vector<16x32xf32> -> vector<16x32xf32>
    %9 = arith.addf %5, %8 : vector<16x32xf32>
    %c0_6 = arith.constant 0 : index
    %c0_7 = arith.constant 0 : index
    %10 = vector.load %arg8[%c0_6, %c0_7] : memref<16x32xf32, #tpu.memory_space<vmem>>, vector<16x32xf32>
    tpu.vector_store %arg8[%c0_6, %c0_7], %9 {strides = array<i32>} : memref<16x32xf32, #tpu.memory_space<vmem>>, vector<16x32xf32>,
    %c0_i32_8 = arith.constant 0 : i32
    %11 = arith.cmpi eq, %arg2, %c0_i32_8 : i32
    %12 = arith.extui %11 : i1 to i32
    %c0_i32_9 = arith.constant 0 : i32
    %13 = arith.cmpi ne, %12, %c0_i32_9 : i32
    scf.if %13 {
      %c0_10 = arith.constant 0 : index
      %c0_11 = arith.constant 0 : index
      %14 = vector.load %arg8[%c0_10, %c0_11] : memref<16x32xf32, #tpu.memory_space<vmem>>, vector<16x32xf32>
      %c0_12 = arith.constant 0 : index
      %c0_13 = arith.constant 0 : index
      %15 = vector.load %arg5[%c0_12, %c0_13] : memref<1x32xf32, #tpu.memory_space<vmem>>, vector<1x32xf32>
      %16 = vector.broadcast %15 : vector<1x32xf32> to vector<16x32xf32>
      %17 = arith.addf %14, %16 : vector<16x32xf32>
      %c0_14 = arith.constant 0 : index
      %c0_15 = arith.constant 0 : index
      %18 = vector.load %arg6[%c0_14, %c0_15] : memref<16x32xf32, #tpu.memory_space<vmem>>, vector<16x32xf32>
      %19 = arith.addf %17, %18 : vector<16x32xf32>
      %c0_16 = arith.constant 0 : index
      %c0_17 = arith.constant 0 : index
      %20 = vector.load %arg7[%c0_16, %c0_17] : memref<16x32xf32, #tpu.memory_space<vmem>>, vector<16x32xf32>
      tpu.vector_store %arg7[%c0_16, %c0_17], %19 {strides = array<i32>} : memref<16x32xf32, #tpu.memory_space<vmem>>, vector<16x32xf32>,
    } else {
    }
    return
  }
  func.func @transform_0(%arg0: i32, %arg1: i32, %arg2: i32) -> (i32, i32) {
    %c0_i32 = arith.constant 0 : i32
    return %arg0, %arg2 : i32, i32
  }
  func.func @transform_1(%arg0: i32, %arg1: i32, %arg2: i32) -> (i32, i32) {
    %c0_i32 = arith.constant 0 : i32
    return %arg2, %arg1 : i32, i32
  }
  func.func @transform_2(%arg0: i32, %arg1: i32, %arg2: i32) -> (i32, i32) {
    %c0_i32 = arith.constant 0 : i32
    %c0_i32_0 = arith.constant 0 : i32
    return %c0_i32, %arg1 : i32, i32
  }
  func.func @transform_3(%arg0: i32, %arg1: i32, %arg2: i32) -> (i32, i32) {
    %c0_i32 = arith.constant 0 : i32
    return %arg0, %arg1 : i32, i32
  }
  func.func @transform_4(%arg0: i32, %arg1: i32, %arg2: i32) -> (i32, i32) {
    %c0_i32 = arith.constant 0 : i32
    return %arg0, %arg1 : i32, i32
  }
}

module attributes {stable_mosaic.version = 11 : i64} {
  func.func @_linear_kernel(%arg0: i32, %arg1: i32, %arg2: i32, %arg3: memref<16x32xf32, #tpu.memory_space<vmem>>, %arg4: memref<1x32xf32, #tpu.memory_space<vmem>>, %arg5: memref<1x32xf32, #tpu.memory_space<vmem>>, %arg6: memref<32x256xbf16, #tpu.memory_space<vmem>>, %arg7: memref<16x256xf32, #tpu.memory_space<vmem>>, %arg8: memref<16x256xf32, #tpu.memory_space<vmem>>) attributes {dimension_semantics = [#tpu.dimension_semantics<parallel>, #tpu.dimension_semantics<parallel>, #tpu.dimension_semantics<arbitrary>], iteration_bounds = array<i64: 1, 1, 1>, scalar_prefetch = 0 : i64, scratch_operands = 1 : i64, tpu.core_type = #tpu.core_type<tc>, window_params = [{transform_indices = @transform_0, window_bounds = array<i64: 16, 32>}, {pipeline_mode = #tpu.pipeline_mode<synchronous>, transform_indices = @transform_1, window_bounds = array<i64: 1, 32>}, {pipeline_mode = #tpu.pipeline_mode<synchronous>, transform_indices = @transform_2, window_bounds = array<i64: 1, 32>}, {transform_indices = @transform_3, window_bounds = array<i64: 32, 256>}, {transform_indices = @transform_4, window_bounds = array<i64: 16, 256>}]} {
    %c0_i32 = arith.constant 0 : i32
    %0 = arith.cmpi eq, %arg2, %c0_i32 : i32
    %1 = arith.extui %0 : i1 to i32
    %c0_i32_0 = arith.constant 0 : i32
    %2 = arith.cmpi ne, %1, %c0_i32_0 : i32
    scf.if %2 {
      %cst_19 = arith.constant 0.000000e+00 : f32
      %35 = vector.broadcast %cst_19 : f32 to vector<16x256xf32>
      %c0_20 = arith.constant 0 : index
      %c0_21 = arith.constant 0 : index
      %36 = vector.load %arg8[%c0_20, %c0_21] : memref<16x256xf32, #tpu.memory_space<vmem>>, vector<16x256xf32>
      tpu.vector_store %arg8[%c0_20, %c0_21], %35 {strides = array<i32>} : memref<16x256xf32, #tpu.memory_space<vmem>>, vector<16x256xf32>,
    } else {
    }
    %c0 = arith.constant 0 : index
    %c0_1 = arith.constant 0 : index
    %3 = vector.load %arg3[%c0, %c0_1] : memref<16x32xf32, #tpu.memory_space<vmem>>, vector<16x32xf32>
    %cst = arith.constant dense<0.000000e+00> : vector<16xf32>
    %4 = vector.multi_reduction <add>, %3, %cst [1] : vector<16x32xf32> to vector<16xf32>
    %5 = vector.shape_cast %4 : vector<16xf32> to vector<16x1xf32>
    %cst_2 = arith.constant 3.200000e+01 : f32
    %6 = vector.broadcast %cst_2 : f32 to vector<16x1xf32>
    %7 = arith.divf %5, %6 : vector<16x1xf32>
    %8 = vector.broadcast %7 : vector<16x1xf32> to vector<16x32xf32>
    %9 = arith.subf %3, %8 : vector<16x32xf32>
    %10 = arith.mulf %9, %9 : vector<16x32xf32>
    %cst_3 = arith.constant dense<0.000000e+00> : vector<16xf32>
    %11 = vector.multi_reduction <add>, %10, %cst_3 [1] : vector<16x32xf32> to vector<16xf32>
    %12 = vector.shape_cast %11 : vector<16xf32> to vector<16x1xf32>
    %cst_4 = arith.constant 3.200000e+01 : f32
    %13 = vector.broadcast %cst_4 : f32 to vector<16x1xf32>
    %14 = arith.divf %12, %13 : vector<16x1xf32>
    %cst_5 = arith.constant 9.99999974E-6 : f32
    %15 = vector.broadcast %cst_5 : f32 to vector<16x1xf32>
    %16 = arith.addf %14, %15 : vector<16x1xf32>
    %17 = math.rsqrt %16 : vector<16x1xf32>
    %18 = vector.broadcast %17 : vector<16x1xf32> to vector<16x32xf32>
    %19 = arith.mulf %9, %18 : vector<16x32xf32>
    %c0_6 = arith.constant 0 : index
    %c0_7 = arith.constant 0 : index
    %20 = vector.load %arg4[%c0_6, %c0_7] : memref<1x32xf32, #tpu.memory_space<vmem>>, vector<1x32xf32>
    %21 = vector.broadcast %20 : vector<1x32xf32> to vector<16x32xf32>
    %22 = arith.mulf %19, %21 : vector<16x32xf32>
    %c0_8 = arith.constant 0 : index
    %c0_9 = arith.constant 0 : index
    %23 = vector.load %arg5[%c0_8, %c0_9] : memref<1x32xf32, #tpu.memory_space<vmem>>, vector<1x32xf32>
    %24 = vector.broadcast %23 : vector<1x32xf32> to vector<16x32xf32>
    %25 = arith.addf %22, %24 : vector<16x32xf32>
    %c0_10 = arith.constant 0 : index
    %c0_11 = arith.constant 0 : index
    %26 = vector.load %arg8[%c0_10, %c0_11] : memref<16x256xf32, #tpu.memory_space<vmem>>, vector<16x256xf32>
    %27 = arith.truncf %25 : vector<16x32xf32> to vector<16x32xbf16>
    %c0_12 = arith.constant 0 : index
    %c0_13 = arith.constant 0 : index
    %28 = vector.load %arg6[%c0_12, %c0_13] : memref<32x256xbf16, #tpu.memory_space<vmem>>, vector<32x256xbf16>
    %cst_14 = arith.constant dense<0.000000e+00> : vector<16x256xf32>
    %29 = tpu.matmul %27, %28, %cst_14 {dimension_numbers = #tpu.dot_dimension_numbers<[1], [0], [0], [1], [0, 0, 1, 1], [], []>} : vector<16x32xbf16>, vector<32x256xbf16>, vector<16x256xf32> -> vector<16x256xf32>
    %30 = arith.addf %26, %29 : vector<16x256xf32>
    %c0_15 = arith.constant 0 : index
    %c0_16 = arith.constant 0 : index
    %31 = vector.load %arg8[%c0_15, %c0_16] : memref<16x256xf32, #tpu.memory_space<vmem>>, vector<16x256xf32>
    tpu.vector_store %arg8[%c0_15, %c0_16], %30 {strides = array<i32>} : memref<16x256xf32, #tpu.memory_space<vmem>>, vector<16x256xf32>,
    %c0_i32_17 = arith.constant 0 : i32
    %32 = arith.cmpi eq, %arg2, %c0_i32_17 : i32
    %33 = arith.extui %32 : i1 to i32
    %c0_i32_18 = arith.constant 0 : i32
    %34 = arith.cmpi ne, %33, %c0_i32_18 : i32
    scf.if %34 {
      %c0_19 = arith.constant 0 : index
      %c0_20 = arith.constant 0 : index
      %35 = vector.load %arg8[%c0_19, %c0_20] : memref<16x256xf32, #tpu.memory_space<vmem>>, vector<16x256xf32>
      %c0_21 = arith.constant 0 : index
      %c0_22 = arith.constant 0 : index
      %36 = vector.load %arg7[%c0_21, %c0_22] : memref<16x256xf32, #tpu.memory_space<vmem>>, vector<16x256xf32>
      tpu.vector_store %arg7[%c0_21, %c0_22], %35 {strides = array<i32>} : memref<16x256xf32, #tpu.memory_space<vmem>>, vector<16x256xf32>,
    } else {
    }
    return
  }
  func.func @transform_0(%arg0: i32, %arg1: i32, %arg2: i32) -> (i32, i32) {
    %c0_i32 = arith.constant 0 : i32
    return %arg0, %arg2 : i32, i32
  }
  func.func @transform_1(%arg0: i32, %arg1: i32, %arg2: i32) -> (i32, i32) {
    %c0_i32 = arith.constant 0 : i32
    %c0_i32_0 = arith.constant 0 : i32
    %c0_i32_1 = arith.constant 0 : i32
    return %c0_i32, %c0_i32_0 : i32, i32
  }
  func.func @transform_2(%arg0: i32, %arg1: i32, %arg2: i32) -> (i32, i32) {
    %c0_i32 = arith.constant 0 : i32
    %c0_i32_0 = arith.constant 0 : i32
    %c0_i32_1 = arith.constant 0 : i32
    return %c0_i32, %c0_i32_0 : i32, i32
  }
  func.func @transform_3(%arg0: i32, %arg1: i32, %arg2: i32) -> (i32, i32) {
    %c0_i32 = arith.constant 0 : i32
    return %arg2, %arg1 : i32, i32
  }
  func.func @transform_4(%arg0: i32, %arg1: i32, %arg2: i32) -> (i32, i32) {
    %c0_i32 = arith.constant 0 : i32
    return %arg0, %arg1 : i32, i32
  }
}

</mosaic_0001>

<bundles_post_ra>
// kernel: gpt_forward.11
= control target key start
LH: loop header
LB: loop body
LE: loop exit
PB: predicated region body
PF: predicated region fallthrough
CT: control target
= control target key end

     0   :  { %vm30_vm0 = vcmask 261120   ;;  %v202_v15 = vmov 0.0   ;;  %vm203_vm1 = vmmov 0   ;;  %vm25_vm2 = vcmask 785408   ;;  %s270_s0 = inlined_call_operand.vmem [shape: f32[16,32], index: 0, kind: input, shape index: {}]   ;;  %s271_s3 = inlined_call_operand.vmem [shape: bf16[32,96], index: 3, kind: input, shape index: {}]   ;;  %s272_s1 = inlined_call_operand.vmem [shape: f32[1,32], index: 1, kind: input, shape index: {}]   ;;  %s273_s2 = inlined_call_operand.vmem [shape: f32[1,32], index: 2, kind: input, shape index: {}]   ;;  %s274_s4 = inlined_call_operand.vmem [shape: f32[1,96], index: 4, kind: input, shape index: {}]   ;;  %s275_s5 = inlined_call_operand.vmem [shape: bf16[16,96], index: 5, kind: output, shape index: {}]  }
   0x1   :  { %v28_v0 = vld [vmem:[%s270_s0] sm:$0xff]  ;;  %v29_v1 = vld [vmem:[%s270_s0 + $0x8] sm:$0xff]  ;;  %186 = vmatprep.subr.bf16.mxu0 %v202_v15  ;;  %190 = vmatprep.mubr.msk.bf16.mxu0 %vm203_vm1, %v202_v15  ;;  %26 = vst.msk [vmem:[#allocation2] sm:$0xff] %vm25_vm2, %v202_v15  ;;  %27 = vst.msk [vmem:[#allocation2 + $0x8] sm:$0xff] %vm25_vm2, %v202_v15  ;;  %vm166_vm3 = vcmask 781312  }
   0x2   :  { %v31_v2 = vsel %vm30_vm0, %v28_v0, 0.0  ;;  %v34_v3 = vsel %vm30_vm0, %v29_v1, 0.0  ;;  %v196_v14 = vld [vmem:[%s271_s3] sm:$0xff]   ;;  %v197_v16 = vld [vmem:[%s271_s3 + $0x8] sm:$0xff]  }
   0x3   :  { %32 = vadd.xlane.f32.xlu0 %v31_v2  ;;  %187 = vmatpush3.bf16.msra.mxu0 %v196_v14  ;;  %v173_v25 = vld [vmem:[%s272_s1] ss:$0 sm:$0xff] }
   0x4   :  { %188 = vmatprep.subr.bf16.mxu0 %v202_v15  ;;  %v174_v29 = vld [vmem:[%s273_s2] ss:$0 sm:$0xff] }
   0x5   :  { %v178_v42 = vld [vmem:[%s274_s4] ss:$0 sm:$0xff] }
   0x7   :  { %35 = vadd.xlane.f32.xlu0 %v34_v3  ;;  %189 = vmatpush3.bf16.msra.mxu0 %v197_v16 }
   0x8   :  { %v76_v34 = vld [vmem:[#allocation2] sm:$0xff]  ;;  %v77_v36 = vld [vmem:[#allocation2 + $0x8] sm:$0xff] }
  0x90   :  { %v33_v4 = vpop.xlane.xlu0 %32 }
  0x91   :  { %v38_v5 = vmul.f32 0.03125, %v33_v4 }
  0x93   :  { %v40_v6 = vsub.f32 %v28_v0, %v38_v5 }
  0x94   :  { %v36_v7 = vpop.xlane.xlu0 %35 }
  0x95   :  { %v39_v8 = vmul.f32 0.03125, %v36_v7  ;;  %v42_v9 = vmul.f32 %v40_v6, %v40_v6 }
  0x97   :  { %v41_v10 = vsub.f32 %v29_v1, %v39_v8  ;;  %v44_v11 = vsel %vm30_vm0, %v42_v9, 0.0 }
  0x98   :  { %45 = vadd.xlane.f32.xlu1 %v44_v11 }
  0x99   :  { %v43_v12 = vmul.f32 %v41_v10, %v41_v10 }
  0x9b   :  { %v47_v13 = vsel %vm30_vm0, %v43_v12, 0.0 }
  0x9c   :  { %48 = vadd.xlane.f32.xlu1 %v47_v13 }
 0x125   :  { %v46_v17 = vpop.xlane.xlu1 %45 }
 0x126   :  { %v50_v18 = vmul.f32 0.03125, %v46_v17 }
 0x128   :  { %v52_v19 = vadd.f32 1e-05, %v50_v18 }
 0x129   :  { %v49_v20 = vpop.xlane.xlu1 %48 }
 0x12a   :  { %198 = vrsqrt.f32 %v52_v19  ;;  %v51_v21 = vmul.f32 0.03125, %v49_v20 }
 0x12c   :  { %v53_v22 = vadd.f32 1e-05, %v51_v21 }
 0x12e   :  { %200 = vrsqrt.f32 %v53_v22 }
 0x134   :  { %v199_v23 = vpop.eup %198 }
 0x135   :  { %v56_v24 = vmul.f32 %v199_v23, %v40_v6 }
 0x137   :  { %v65_v28 = vmul.f32 %v173_v25, %v56_v24 }
 0x138   :  { %v201_v26 = vpop.eup %200 }
 0x139   :  { %v57_v27 = vmul.f32 %v201_v26, %v41_v10  ;;  %v74_v31 = vadd.f32 %v174_v29, %v65_v28 }
 0x13b   :  { %v66_v30 = vmul.f32 %v173_v25, %v57_v27 }
 0x13d   :  { %v75_v32 = vadd.f32 %v174_v29, %v66_v30 }
 0x13f   :  { %v78_v33 = vpack.c.bf16 %v75_v32, %v74_v31 }
 0x141   :  { %191 = vmatmul.mubr.msk.bf16.vlgmr.msra.gmra.mrb[0].mxu0 %vm30_vm0, %v78_v33 }
 0x214   :  { %v132_v35 = vpop.f32.mrb[0].mxu0 }
 0x215   :  { %v139_v37 = vadd.f32 %v132_v35, %v76_v34  ;;  %v192_v38 = vpop.f32.mrb[1].mxu0 }
 0x216   :  { %v135_v39 = vpop.f32.mrb[2].mxu0 }
 0x217   :  { %142 = vst.msk [vmem:[#allocation2] sm:$0xff] %vm25_vm2, %v139_v37  ;;  %v140_v40 = vadd.f32 %v135_v39, %v77_v36  ;;  %v193_v41 = vpop.f32.mrb[3].mxu0 }
 0x219   :  { %143 = vst.msk [vmem:[#allocation2 + $0x8] sm:$0xff] %vm25_vm2, %v140_v40 }
 0x21e   :  { %v147_v43 = vld [vmem:[#allocation2] sm:$0xff] }
 0x21f   :  { %v156_v44 = vadd.f32 %v178_v42, %v147_v43 }
 0x220   :  { %v148_v45 = vld [vmem:[#allocation2 + $0x8] sm:$0xff] }
 0x221   :  { %v181_v46 = vpack.c.bf16 %v156_v44, %v156_v44  ;;  %v157_v47 = vadd.f32 %v178_v42, %v148_v45 }
 0x223   :  { %167 = vst.msk [vmem:[%s275_s5] sm:$0xf] %vm166_vm3, %v181_v46  ;;  %v182_v48 = vpack.c.bf16 %v157_v47, %v157_v47 }
 0x225   :  { %168 = vst.msk [vmem:[%s275_s5 + $0x4] sm:$0xf] %vm166_vm3, %v182_v48 }

// kernel: gpt_forward.13
= control target key start
LH: loop header
LB: loop body
LE: loop exit
PB: predicated region body
PF: predicated region fallthrough
CT: control target
= control target key end

     0   :  { %vm22_vm0 = vcmask 261120   ;;  %v144_v0 = vmov 0.0   ;;  %vm145_vm1 = vmmov 0   ;;  %s202_s1 = inlined_call_operand.vmem [shape: bf16[32,32], index: 1, kind: input, shape index: {}]   ;;  %s203_s0 = inlined_call_operand.vmem [shape: bf16[16,32], index: 0, kind: input, shape index: {}]   ;;  %s204_s2 = inlined_call_operand.vmem [shape: f32[1,32], index: 2, kind: input, shape index: {}]   ;;  %s205_s3 = inlined_call_operand.vmem [shape: f32[16,32], index: 3, kind: input, shape index: {}]   ;;  %s206_s4 = inlined_call_operand.vmem [shape: f32[16,32], index: 4, kind: output, shape index: {}]  }
   0x1   :  { %131 = vmatprep.subr.bf16.mxu0 %v144_v0  ;;  %v141_v1 = vld [vmem:[%s202_s1] sm:$0xff]   ;;  %135 = vmatprep.mubr.msk.bf16.mxu0 %vm145_vm1, %v144_v0  ;;  %23 = vst.msk [vmem:[#allocation2] sm:$0xff] %vm22_vm0, %v144_v0  ;;  %24 = vst.msk [vmem:[#allocation2 + $0x8] sm:$0xff] %vm22_vm0, %v144_v0  ;;  %v142_v2 = vld [vmem:[%s202_s1 + $0x8] sm:$0xff]  }
   0x2   :  { %132 = vmatpush3.bf16.msra.mxu0 %v141_v1  ;;  %v143_v3 = vld [vmem:[%s203_s0] sm:$0xff]   ;;  %v114_v17 = vld [vmem:[%s205_s3 + $0x8] sm:$0xff] }
   0x3   :  { %133 = vmatprep.subr.bf16.mxu0 %v144_v0  ;;  %v127_v12 = vld [vmem:[%s204_s2] ss:$0 sm:$0xff] }
   0x4   :  { %v113_v14 = vld [vmem:[%s205_s3] sm:$0xff] }
   0x6   :  { %134 = vmatpush3.bf16.msra.mxu0 %v142_v2 }
   0x8   :  { %v27_v4 = vld [vmem:[#allocation2] sm:$0xff]  ;;  %v28_v6 = vld [vmem:[#allocation2 + $0x8] sm:$0xff] }
   0x9   :  { %136 = vmatmul.mubr.msk.bf16.vlgmr.msra.gmra.mrb[0].mxu0 %vm22_vm0, %v143_v3 }
  0xdc   :  { %v88_v5 = vpop.f32.mrb[0].mxu0 }
  0xdd   :  { %v95_v7 = vadd.f32 %v88_v5, %v27_v4  ;;  %v137_v8 = vpop.f32.mrb[1].mxu0 }
  0xde   :  { %v91_v9 = vpop.f32.mrb[2].mxu0 }
  0xdf   :  { %97 = vst.msk [vmem:[#allocation2] sm:$0xff] %vm22_vm0, %v95_v7  ;;  %v96_v10 = vadd.f32 %v91_v9, %v28_v6  ;;  %v138_v11 = vpop.f32.mrb[3].mxu0 }
  0xe1   :  { %98 = vst.msk [vmem:[#allocation2 + $0x8] sm:$0xff] %vm22_vm0, %v96_v10 }
  0xe6   :  { %v102_v13 = vld [vmem:[#allocation2] sm:$0xff] }
  0xe7   :  { %v111_v15 = vadd.f32 %v127_v12, %v102_v13 }
  0xe8   :  { %v103_v16 = vld [vmem:[#allocation2 + $0x8] sm:$0xff] }
  0xe9   :  { %v115_v18 = vadd.f32 %v113_v14, %v111_v15  ;;  %v112_v19 = vadd.f32 %v127_v12, %v103_v16 }
  0xeb   :  { %117 = vst.msk [vmem:[%s206_s4] sm:$0xff] %vm22_vm0, %v115_v18  ;;  %v116_v20 = vadd.f32 %v114_v17, %v112_v19 }
  0xed   :  { %118 = vst.msk [vmem:[%s206_s4 + $0x8] sm:$0xff] %vm22_vm0, %v116_v20 }

// kernel: gpt_forward.12
= control target key start
LH: loop header
LB: loop body
LE: loop exit
PB: predicated region body
PF: predicated region fallthrough
CT: control target
= control target key end

     0   :  { %s1263_s12 = smov 0   ;;  %s1265_s13 = smov 0   ;;  %s1453_s0 = inlined_call_operand.vmem [shape: bf16[3,2,4,8,8], index: 0, kind: input, shape index: {}, may-alias: {0,1,2}]   ;;  %s1454_s1 = inlined_call_operand.vmem [shape: bf16[3,2,4,8,8], index: 1, kind: input, shape index: {}, may-alias: {0,1,2}]   ;;  %s1455_s2 = inlined_call_operand.vmem [shape: bf16[3,2,4,8,8], index: 2, kind: input, shape index: {}, may-alias: {0,1,2}]   ;;  %s1456_s3 = inlined_call_operand.vmem [shape: bf16[2,4,8,8], index: 3, kind: output, shape index: {}]  }
   0x1   :  { %s1267_s14 = smov 0  }
   0x2 LB: > { %s32_s15 = sadd.s32 1, %s1233_s13  ;;  %p1057_p0 = scmp.ge.s32.totalorder %s1237_s14, 1  ;;  %s1237_s14 = sphi %s1267_s14, %s13_s14   ;;  %s1233_s13 = sphi %s1265_s13, %s1458_s13   ;;  %s1229_s12 = sphi %s1263_s12, %s1457_s12  }
   0x3   : > { %p34_p1 = scmp.ge.s32.totalorder %s32_s15, 2  ;;  %p211_p2 = scmp.lt.s32.totalorder %s1237_s14, 3 }
   0x5   : > { %s1460_s15 = smov (%p34_p1, %s32_s15), 0  ;;  %p212_p3 = pnand %p1057_p0, %p211_p2 }
   0x6   : > { %p263_p4 = scmp.lt.s32.totalorder (!%p212_p3), %s1229_s12, 1  ;;  %vm319_vm0 = vcmask (!%p212_p3), 64512   ;;  %v1239_v0 = vmov (!%p212_p3), 0.0   ;;  %vm1240_vm1 = vmmov (!%p212_p3), 0   ;;  %vm310_vm2 = vcmask (!%p212_p3), 7168  }
   0x7   : > { %215 = sbr.rel (%p212_p3) target bundleno = 836 (0x344), region = 32  ;;  %1113 = vmatprep.subr.bf16.mxu0 (!%p212_p3), %v1239_v0  ;;  %320 = vst.msk [vmem:[#allocation4] sm:$0xff] (!%p212_p3), %vm319_vm0, %v1239_v0  ;;  %321 = vst.msk [vmem:[#allocation4 + $0x8] sm:$0xff] (!%p212_p3), %vm319_vm0, %v1239_v0  ;;  %1119 = vmatprep.subr.bf16.mxu1 (!%p212_p3), %v1239_v0  ;;  %v1241_v23 = vmov (!%p212_p3), -1e+30   ;;  %v329_v24 = vlaneseq (!%p212_p3)  ;;  %v1242_v51 = vmov (!%p212_p3), 0  }
   0x8   : > { %322 = vst.msk [vmem:[#allocation4 + $0x10] sm:$0xff] (!%p212_p3), %vm319_vm0, %v1239_v0  ;;  %323 = vst.msk [vmem:[#allocation4 + $0x18] sm:$0xff] (!%p212_p3), %vm319_vm0, %v1239_v0  ;;  %1115 = vmatprep.mubr.msk.bf16.mxu0 (!%p212_p3), %vm1240_vm1, %v1239_v0  ;;  %1121 = vmatprep.mubr.msk.bf16.mxu1 (!%p212_p3), %vm1240_vm1, %v1239_v0  ;;  %vm682_vm4 = vcmask (!%p212_p3), 1043456   ;;  %vm920_vm5 = vcmask (!%p212_p3), 60416  }
   0x9   : > { %311 = vst.msk [vmem:[#allocation2] sm:$0xff] (!%p212_p3), %vm310_vm2, %v1241_v23  ;;  %312 = vst.msk [vmem:[#allocation2 + $0x8] sm:$0xff] (!%p212_p3), %vm310_vm2, %v1241_v23  ;;  %v330_v25 = vshrl.u32 (!%p212_p3), %v329_v24, 7  ;;  %v335_v26 = vand.u32 (!%p212_p3), 127, %v329_v24  ;;  %1189 = vset.pattern.permute.xlu0 (!%p212_p3), %v1242_v51  ;;  %1190 = vset.pattern.permute.xlu1 (!%p212_p3), %v1242_v51 }
   0xa   : > { %313 = vst.msk [vmem:[#allocation2 + $0x10] sm:$0xff] (!%p212_p3), %vm310_vm2, %v1241_v23  ;;  %314 = vst.msk [vmem:[#allocation2 + $0x18] sm:$0xff] (!%p212_p3), %vm310_vm2, %v1241_v23 }
   0xb   : > { %315 = vst.msk [vmem:[#allocation3] sm:$0xff] (!%p212_p3), %vm310_vm2, %v1239_v0  ;;  %316 = vst.msk [vmem:[#allocation3 + $0x8] sm:$0xff] (!%p212_p3), %vm310_vm2, %v1239_v0  ;;  %vm338_vm3 = vcmp.le.s32.totalorder (!%p212_p3), %v335_v26, %v330_v25 }
   0xc   : > { %317 = vst.msk [vmem:[#allocation3 + $0x10] sm:$0xff] (!%p212_p3), %vm310_vm2, %v1239_v0  ;;  %318 = vst.msk [vmem:[#allocation3 + $0x18] sm:$0xff] (!%p212_p3), %vm310_vm2, %v1239_v0 }
   0xe   : > { %s1462_s12 = smov (!%p263_p4, %s1229_s12), 1 }
   0xf   : > { %s1295_s16 = sshll.u32 %s1462_s12, 4 }
  0x10   : > { %s991_s19 = scalar_lea.vmem %s1454_s1, %s1295_s16  ;;  %s270_s22 = scalar_lea.vmem %s1453_s0, %s1295_s16  ;;  %v1357_v52 = vld [vmem:[#allocation2] sm:$0xff]  ;;  %v1362_v55 = vld [vmem:[#allocation2 + $0x8] sm:$0xff] }
  0x11   : > { %v1066_v1 = vld [vmem:[%s991_s19 + $0x20] sm:$0xf]  ;;  %v1067_v2 = vld [vmem:[%s991_s19 + $0x24] sm:$0xf]  ;;  %v1096_v8 = vld [vmem:[%s270_s22 + $0x8] sm:$0xff]   ;;  %s996_s25 = scalar_lea.vmem %s1455_s2, %s1295_s16  ;;  %s304_s28 = scalar_lea.vmem %s1456_s3, %s1295_s16 }
  0x12   : > { %v1089_v3 = vld [vmem:[%s270_s22] sm:$0xff]   ;;  %v368_v4 = vsel %vm319_vm0, %v1066_v1, 0  ;;  %v414_v5 = vsel %vm319_vm0, %v1067_v2, 0  ;;  %v1068_v11 = vld [vmem:[%s991_s19 + $0x28] sm:$0xf]  ;;  %v1094_v13 = vunpack.c.l.bf16 %v1096_v8  ;;  %v1095_v14 = vunpack.c.h.bf16 %v1096_v8  ;;  %v1372_v59 = vld [vmem:[#allocation2 + $0x10] sm:$0xff] }
  0x13   : > { %v1090_v6 = vunpack.c.l.bf16 %v1089_v3  ;;  %v1091_v7 = vunpack.c.h.bf16 %v1089_v3  ;;  %1114 = vmatpush3.bf16.xpose.msra.mxu0 %v368_v4  ;;  %1120 = vmatpush3.bf16.xpose.msra.mxu1 %v414_v5  ;;  %v1069_v12 = vld [vmem:[%s991_s19 + $0x2c] sm:$0xf]  ;;  %v460_v17 = vsel %vm319_vm0, %v1068_v11, 0  ;;  %v1382_v63 = vld [vmem:[#allocation2 + $0x18] sm:$0xff]  ;;  %v1070_v5 = vld [vmem:[%s996_s25 + $0x40] sm:$0xf] }
  0x14   : > { %1125 = vmatprep.subr.bf16.mxu0 %v1239_v0  ;;  %1131 = vmatprep.subr.bf16.mxu1 %v1239_v0  ;;  %v506_v18 = vsel %vm319_vm0, %v1069_v12, 0  ;;  %v349_v19 = vmul.f32 0.35355338, %v1094_v13  ;;  %v350_v20 = vmul.f32 0.35355338, %v1095_v14  ;;  %v620_v51 = vld [vmem:[#allocation3 + $0x10] sm:$0xff] }
  0x15   : > { %v347_v9 = vmul.f32 0.35355338, %v1090_v6  ;;  %v348_v10 = vmul.f32 0.35355338, %v1091_v7  ;;  %v684_v6 = vsel %vm682_vm4, %v1070_v5, 0  ;;  %v647_v5 = vld [vmem:[#allocation4] sm:$0xff] }
  0x16   : > { %v353_v21 = vpack.c.bf16 %v349_v19, %v349_v19  ;;  %v354_v22 = vpack.c.bf16 %v350_v20, %v350_v20  ;;  %v1071_v7 = vld [vmem:[%s996_s25 + $0x44] sm:$0xf]  ;;  %v1073_v11 = vld [vmem:[%s996_s25 + $0x4c] sm:$0xf] }
  0x17   : > { %v351_v15 = vpack.c.bf16 %v347_v9, %v347_v9  ;;  %v352_v16 = vpack.c.bf16 %v348_v10, %v348_v10  ;;  %v730_v8 = vsel %vm682_vm4, %v1071_v7, 0  ;;  %v1072_v9 = vld [vmem:[%s996_s25 + $0x48] sm:$0xf]  ;;  %v822_v12 = vsel %vm682_vm4, %v1073_v11, 0 }
  0x18   : > { %v776_v10 = vsel %vm682_vm4, %v1072_v9, 0 }
  0x1a   : > { %1116 = vmatmul.mubr.msk.bf16.vlgmr.msra.gmra.mrb[0].mxu0 %vm319_vm0, %v351_v15  ;;  %1122 = vmatmul.mubr.msk.bf16.vlgmr.msra.gmra.mrb[0].mxu1 %vm319_vm0, %v352_v16 }
  0x1b   : > { %1126 = vmatpush3.bf16.xpose.msra.mxu0 %v460_v17  ;;  %1132 = vmatpush3.bf16.xpose.msra.mxu1 %v506_v18 }
  0x1c   : > { %1127 = vmatprep.mubr.msk.bf16.mxu0 %vm1240_vm1, %v1239_v0  ;;  %1133 = vmatprep.mubr.msk.bf16.mxu1 %vm1240_vm1, %v1239_v0 }
  0x1d   : > { %1137 = vmatprep.subr.bf16.mxu0 %v1239_v0  ;;  %1143 = vmatprep.subr.bf16.mxu1 %v1239_v0 }
  0x22   : > { %1128 = vmatmul.mubr.msk.bf16.vlgmr.msra.gmra.mrb[4].mxu0 %vm319_vm0, %v353_v21  ;;  %1134 = vmatmul.mubr.msk.bf16.vlgmr.msra.gmra.mrb[4].mxu1 %vm319_vm0, %v354_v22 }
  0x23   : > { %1139 = vmatprep.mubr.msk.bf16.mxu0 %vm1240_vm1, %v1239_v0  ;;  %1145 = vmatprep.mubr.msk.bf16.mxu1 %vm1240_vm1, %v1239_v0 }
  0x24   : > { %1138 = vmatpush3.bf16.msra.mxu0 %v684_v6  ;;  %1144 = vmatpush3.bf16.msra.mxu1 %v730_v8  ;;  %v648_v8 = vld [vmem:[#allocation4 + $0x8] sm:$0xff] }
  0x25   : > { %1149 = vmatprep.subr.bf16.mxu0 %v1239_v0  ;;  %1155 = vmatprep.subr.bf16.mxu1 %v1239_v0 }
  0xed   : > { %v404_v27 = vpop.f32.mrb[0].mxu0  ;;  %v450_v28 = vpop.f32.mrb[0].mxu1 }
  0xee   : > { %v1338_v29 = vsel %vm338_vm3, %v404_v27, -1e+30  ;;  %v1117_v30 = vpop.f32.mrb[1].mxu0  ;;  %v1341_v31 = vsel %vm338_vm3, %v450_v28, -1e+30  ;;  %v1123_v32 = vpop.f32.mrb[1].mxu1 }
  0xef   : > { %v407_v33 = vpop.f32.mrb[2].mxu0  ;;  %v558_v34 = vsel %vm319_vm0, %v1338_v29, -inf  ;;  %v453_v35 = vpop.f32.mrb[2].mxu1  ;;  %v561_v38 = vsel %vm319_vm0, %v1341_v31, -inf }
  0xf0   : > { %559 = vmax.xlane.f32.xlu0 %v558_v34  ;;  %v1118_v36 = vpop.f32.mrb[3].mxu0  ;;  %v1124_v37 = vpop.f32.mrb[3].mxu1 }
  0xf4   : > { %562 = vmax.xlane.f32.xlu0 %v561_v38 }
  0xf5   : > { %v496_v39 = vpop.f32.mrb[4].mxu0  ;;  %v542_v40 = vpop.f32.mrb[4].mxu1 }
  0xf6   : > { %v1348_v41 = vsel %vm338_vm3, %v496_v39, -1e+30  ;;  %v1129_v42 = vpop.f32.mrb[5].mxu0  ;;  %v1351_v43 = vsel %vm338_vm3, %v542_v40, -1e+30  ;;  %v1135_v44 = vpop.f32.mrb[5].mxu1 }
  0xf7   : > { %v499_v45 = vpop.f32.mrb[6].mxu0  ;;  %v564_v46 = vsel %vm319_vm0, %v1348_v41, -inf  ;;  %v545_v47 = vpop.f32.mrb[6].mxu1  ;;  %v567_v50 = vsel %vm319_vm0, %v1351_v43, -inf  ;;  %v618_v44 = vld [vmem:[#allocation3] sm:$0xff] }
  0xf8   : > { %565 = vmax.xlane.f32.xlu1 %v564_v46  ;;  %v1130_v48 = vpop.f32.mrb[7].mxu0  ;;  %v1136_v49 = vpop.f32.mrb[7].mxu1  ;;  %v619_v47 = vld [vmem:[#allocation3 + $0x8] sm:$0xff] }
  0xfc   : > { %568 = vmax.xlane.f32.xlu1 %v567_v50 }
 0x17d   : > { %v560_v53 = vpop.xlane.xlu0 %559 }
 0x17e   : > { %v1360_v54 = vmax.f32 %v1357_v52, %v560_v53 }
 0x180   : > { %v574_v56 = vsub.f32 %v1357_v52, %v1360_v54  ;;  %872 = vst.msk [vmem:[#allocation2] sm:$0xff] %vm310_vm2, %v1360_v54  ;;  %588 = vperm.xlu0 %1189, %v1360_v54  }
 0x181   : > { %v563_v57 = vpop.xlane.xlu0 %562 }
 0x182   : > { %v1370_v58 = vmax.f32 %v1362_v55, %v563_v57 }
 0x184   : > { %v575_v60 = vsub.f32 %v1362_v55, %v1370_v58  ;;  %873 = vst.msk [vmem:[#allocation2 + $0x8] sm:$0xff] %vm310_vm2, %v1370_v58  ;;  %593 = vperm.xlu1 %1190, %v1370_v58   ;;  %v621_v55 = vld [vmem:[#allocation3 + $0x18] sm:$0xff] }
 0x185   : > { %v566_v61 = vpop.xlane.xlu1 %565 }
 0x186   : > { %v1380_v62 = vmax.f32 %v1372_v59, %v566_v61  ;;  %v580_v35 = vmul.f32 1.442695, %v575_v60 }
 0x188   : > { %v576_v1 = vsub.f32 %v1372_v59, %v1380_v62  ;;  %874 = vst.msk [vmem:[#allocation2 + $0x10] sm:$0xff] %vm310_vm2, %v1380_v62  ;;  %598 = vperm.xlu1 %1190, %v1380_v62  }
 0x189   : > { %v569_v2 = vpop.xlane.xlu1 %568 }
 0x18a   : > { %v1390_v3 = vmax.f32 %v1382_v63, %v569_v2  ;;  %v582_v38 = vmul.f32 1.442695, %v576_v1 }
 0x18c   : > { %v577_v4 = vsub.f32 %v1382_v63, %v1390_v3  ;;  %875 = vst.msk [vmem:[#allocation2 + $0x18] sm:$0xff] %vm310_vm2, %v1390_v3  ;;  %603 = vperm.xlu1 %1190, %v1390_v3  }
 0x18e   : > { %v584_v39 = vmul.f32 1.442695, %v577_v4 }
 0x1ff   : > { %v589_v13 = vpop.permute.xlu0 %588 }
 0x200   : > { %v606_v14 = vsub.f32 %v1338_v29, %v589_v13 }
 0x202   : > { %v610_v15 = vmul.f32 1.442695, %v606_v14 }
 0x203   : > { %v594_v16 = vpop.permute.xlu1 %593 }
 0x204   : > { %1191 = vpow2.f32 %v610_v15  ;;  %v607_v17 = vsub.f32 %v1341_v31, %v594_v16 }
 0x206   : > { %v612_v18 = vmul.f32 1.442695, %v607_v17  ;;  %v649_v17 = vld [vmem:[#allocation4 + $0x10] sm:$0xff] }
 0x207   : > { %v599_v19 = vpop.permute.xlu1 %598 }
 0x208   : > { %1193 = vpow2.f32 %v612_v18  ;;  %v608_v20 = vsub.f32 %v1348_v41, %v599_v19 }
 0x20a   : > { %v614_v21 = vmul.f32 1.442695, %v608_v20 }
 0x20b   : > { %v604_v22 = vpop.permute.xlu1 %603 }
 0x20c   : > { %1195 = vpow2.f32 %v614_v21  ;;  %v609_v23 = vsub.f32 %v1351_v43, %v604_v22 }
 0x20e   : > { %v1192_v24 = vpop.eup %1191  ;;  %v616_v25 = vmul.f32 1.442695, %v609_v23 }
 0x20f   : > { %v626_v26 = vsel %vm319_vm0, %v1192_v24, 0.0  ;;  %v675_v27 = vpack.c.bf16 %v1192_v24, %v1192_v24  ;;  %v650_v24 = vld [vmem:[#allocation4 + $0x18] sm:$0xff] }
 0x210   : > { %1197 = vpow2.f32 %v616_v25  ;;  %627 = vadd.xlane.f32.xlu1 %v626_v26 }
 0x211   : > { %1140 = vmatmul.mubr.msk.bf16.vlgmr.msra.gmra.mrb[8].mxu0 %vm319_vm0, %v675_v27  ;;  %1199 = vpow2.f32 %v580_v35 }
 0x212   : > { %v1194_v28 = vpop.eup %1193  ;;  %1150 = vmatpush3.bf16.msra.mxu0 %v776_v10  ;;  %1151 = vmatprep.mubr.msk.bf16.mxu0 %vm1240_vm1, %v1239_v0 }
 0x213   : > { %v629_v29 = vsel %vm319_vm0, %v1194_v28, 0.0  ;;  %v676_v30 = vpack.c.bf16 %v1194_v28, %v1194_v28 }
 0x214   : > { %630 = vadd.xlane.f32.xlu0 %v629_v29 }
 0x215   : > { %1146 = vmatmul.mubr.msk.bf16.vlgmr.msra.gmra.mrb[8].mxu1 %vm319_vm0, %v676_v30 }
 0x216   : > { %v1196_v31 = vpop.eup %1195  ;;  %1156 = vmatpush3.bf16.msra.mxu1 %v822_v12  ;;  %1157 = vmatprep.mubr.msk.bf16.mxu1 %vm1240_vm1, %v1239_v0  ;;  %v578_v0 = vmul.f32 1.442695, %v574_v56 }
 0x217   : > { %v632_v32 = vsel %vm319_vm0, %v1196_v31, 0.0  ;;  %v677_v33 = vpack.c.bf16 %v1196_v31, %v1196_v31 }
 0x218   : > { %633 = vadd.xlane.f32.xlu1 %v632_v32  ;;  %1201 = vpow2.f32 %v578_v0 }
 0x219   : > { %1152 = vmatmul.mubr.msk.bf16.vlgmr.msra.gmra.mrb[12].mxu0 %vm319_vm0, %v677_v33  ;;  %1203 = vpow2.f32 %v582_v38 }
 0x21a   : > { %v1198_v34 = vpop.eup %1197  ;;  %1205 = vpow2.f32 %v584_v39 }
 0x21b   : > { %v635_v36 = vsel %vm319_vm0, %v1198_v34, 0.0  ;;  %v678_v37 = vpack.c.bf16 %v1198_v34, %v1198_v34  ;;  %v1200_v40 = vpop.eup %1199 }
 0x21c   : > { %636 = vadd.xlane.f32.xlu1 %v635_v36  ;;  %v623_v49 = vmul.f32 %v1200_v40, %v619_v47 }
 0x21d   : > { %1158 = vmatmul.mubr.msk.bf16.vlgmr.msra.gmra.mrb[12].mxu1 %vm319_vm0, %v678_v37 }
 0x222   : > { %v1202_v41 = vpop.eup %1201 }
 0x223   : > { %v1204_v42 = vpop.eup %1203  ;;  %v622_v45 = vmul.f32 %v1202_v41, %v618_v44 }
 0x224   : > { %v1206_v43 = vpop.eup %1205  ;;  %v624_v53 = vmul.f32 %v1204_v42, %v620_v51 }
 0x225   : > { %v625_v58 = vmul.f32 %v1206_v43, %v621_v55 }
 0x22a   : > { %658 = vperm.xlu0 %1189, %v1200_v40  }
 0x22d   : > { %653 = vperm.xlu1 %1190, %v1202_v41  }
 0x231   : > { %663 = vperm.xlu1 %1190, %v1204_v42  }
 0x235   : > { %668 = vperm.xlu1 %1190, %v1206_v43  }
 0x29d   : > { %v628_v46 = vpop.xlane.xlu1 %627 }
 0x29e   : > { %v638_v48 = vadd.f32 %v628_v46, %v622_v45 }
 0x2a0   : > { %643 = vst.msk [vmem:[#allocation3] sm:$0xff] %vm310_vm2, %v638_v48 }
 0x2a1   : > { %v631_v50 = vpop.xlane.xlu0 %630 }
 0x2a2   : > { %v639_v52 = vadd.f32 %v631_v50, %v623_v49 }
 0x2a4   : > { %644 = vst.msk [vmem:[#allocation3 + $0x8] sm:$0xff] %vm310_vm2, %v639_v52 }
 0x2a5   : > { %v634_v54 = vpop.xlane.xlu1 %633 }
 0x2a6   : > { %v640_v56 = vadd.f32 %v634_v54, %v624_v53 }
 0x2a7   : > { %v880_v57 = vld [vmem:[#allocation3] sm:$0xff] }
 0x2a8   : > { %645 = vst.msk [vmem:[#allocation3 + $0x10] sm:$0xff] %vm310_vm2, %v640_v56  ;;  %1207 = vrcp.f32 %v880_v57 }
 0x2a9   : > { %v637_v59 = vpop.xlane.xlu1 %636  ;;  %v659_v9 = vpop.permute.xlu0 %658 }
 0x2aa   : > { %v641_v60 = vadd.f32 %v637_v59, %v625_v58  ;;  %v672_v15 = vmul.f32 %v659_v9, %v648_v8 }
 0x2ab   : > { %v881_v61 = vld [vmem:[#allocation3 + $0x8] sm:$0xff] }
 0x2ac   : > { %646 = vst.msk [vmem:[#allocation3 + $0x18] sm:$0xff] %vm310_vm2, %v641_v60  ;;  %1209 = vrcp.f32 %v881_v61 }
 0x2ad   : > { %v654_v6 = vpop.permute.xlu1 %653 }
 0x2ae   : > { %v671_v7 = vmul.f32 %v654_v6, %v647_v5 }
 0x2af   : > { %v882_v62 = vld [vmem:[#allocation3 + $0x10] sm:$0xff] }
 0x2b0   : > { %1211 = vrcp.f32 %v882_v62 }
 0x2b1   : > { %v664_v13 = vpop.permute.xlu1 %663 }
 0x2b2   : > { %v1208_v63 = vpop.eup %1207  ;;  %v673_v22 = vmul.f32 %v664_v13, %v649_v17 }
 0x2b3   : > { %894 = vperm.xlu1 %1190, %v1208_v63   ;;  %v883_v1 = vld [vmem:[#allocation3 + $0x18] sm:$0xff] }
 0x2b4   : > { %1213 = vrcp.f32 %v883_v1 }
 0x2b5   : > { %v669_v25 = vpop.permute.xlu1 %668 }
 0x2b6   : > { %v1210_v2 = vpop.eup %1209  ;;  %v674_v30 = vmul.f32 %v669_v25, %v650_v24 }
 0x2b7   : > { %899 = vperm.xlu0 %1189, %v1210_v2  }
 0x2ba   : > { %v1212_v3 = vpop.eup %1211 }
 0x2bb   : > { %904 = vperm.xlu1 %1190, %v1212_v3  }
 0x2be   : > { %v1214_v4 = vpop.eup %1213 }
 0x2bf   : > { %909 = vperm.xlu0 %1189, %v1214_v4  }
 0x2e4   : > { %v720_v10 = vpop.f32.mrb[8].mxu0 }
 0x2e5   : > { %v864_v11 = vadd.f32 %v720_v10, %v671_v7  ;;  %v1141_v12 = vpop.f32.mrb[9].mxu0 }
 0x2e6   : > { %v723_v14 = vpop.f32.mrb[10].mxu0 }
 0x2e7   : > { %868 = vst.msk [vmem:[#allocation4] sm:$0xff] %vm319_vm0, %v864_v11  ;;  %v1142_v16 = vpop.f32.mrb[11].mxu0 }
 0x2e8   : > { %v766_v18 = vpop.f32.mrb[8].mxu1 }
 0x2e9   : > { %v865_v19 = vadd.f32 %v766_v18, %v672_v15  ;;  %v1147_v20 = vpop.f32.mrb[9].mxu1 }
 0x2ea   : > { %v769_v21 = vpop.f32.mrb[10].mxu1 }
 0x2eb   : > { %869 = vst.msk [vmem:[#allocation4 + $0x8] sm:$0xff] %vm319_vm0, %v865_v19  ;;  %v1148_v23 = vpop.f32.mrb[11].mxu1 }
 0x2ec   : > { %v812_v26 = vpop.f32.mrb[12].mxu0 }
 0x2ed   : > { %v866_v27 = vadd.f32 %v812_v26, %v673_v22  ;;  %v1153_v28 = vpop.f32.mrb[13].mxu0 }
 0x2ee   : > { %v815_v29 = vpop.f32.mrb[14].mxu0  ;;  %v888_v0 = vld [vmem:[#allocation4] sm:$0xff] }
 0x2ef   : > { %870 = vst.msk [vmem:[#allocation4 + $0x10] sm:$0xff] %vm319_vm0, %v866_v27  ;;  %v1154_v31 = vpop.f32.mrb[15].mxu0 }
 0x2f0   : > { %v858_v32 = vpop.f32.mrb[12].mxu1 }
 0x2f1   : > { %v867_v33 = vadd.f32 %v858_v32, %v674_v30  ;;  %v1159_v34 = vpop.f32.mrb[13].mxu1 }
 0x2f2   : > { %v861_v35 = vpop.f32.mrb[14].mxu1  ;;  %v889_v40 = vld [vmem:[#allocation4 + $0x8] sm:$0xff] }
 0x2f3   : > { %871 = vst.msk [vmem:[#allocation4 + $0x18] sm:$0xff] %vm319_vm0, %v867_v33  ;;  %v1160_v36 = vpop.f32.mrb[15].mxu1 }
 0x2f6   : > { %v890_v45 = vld [vmem:[#allocation4 + $0x10] sm:$0xff] }
 0x2fa   : > { %v891_v49 = vld [vmem:[#allocation4 + $0x18] sm:$0xff] }
 0x332   : > { %v895_v37 = vpop.permute.xlu1 %894 }
 0x333   : > { %v912_v38 = vmul.f32 %v895_v37, %v888_v0 }
 0x335   : > { %v916_v39 = vpack.c.bf16 %v912_v38, %v912_v38 }
 0x336   : > { %v900_v41 = vpop.permute.xlu0 %899 }
 0x337   : > { %921 = vst.msk [vmem:[%s304_s28] sm:$0xf] %vm920_vm5, %v916_v39  ;;  %v913_v42 = vmul.f32 %v900_v41, %v889_v40 }
 0x339   : > { %v917_v43 = vpack.c.bf16 %v913_v42, %v913_v42 }
 0x33a   : > { %v905_v44 = vpop.permute.xlu1 %904 }
 0x33b   : > { %922 = vst.msk [vmem:[%s304_s28 + $0x4] sm:$0xf] %vm920_vm5, %v917_v43  ;;  %v914_v46 = vmul.f32 %v905_v44, %v890_v45 }
 0x33d   : > { %v918_v47 = vpack.c.bf16 %v914_v46, %v914_v46 }
 0x33e   : > { %v910_v48 = vpop.permute.xlu0 %909 }
 0x33f   : > { %923 = vst.msk [vmem:[%s304_s28 + $0x8] sm:$0xf] %vm920_vm5, %v918_v47  ;;  %v915_v50 = vmul.f32 %v910_v48, %v891_v49 }
 0x341   : > { %v919_v51 = vpack.c.bf16 %v915_v50, %v915_v50 }
 0x343   : > { %924 = vst.msk [vmem:[%s304_s28 + $0xc] sm:$0xf] %vm920_vm5, %v919_v51 }
 0x344 PF: > { %s13_s14 = sadd.s32 1, %s1237_s14   ;;  %s1457_s12 = smov %s1233_s13 }
 0x345   : > { %p10_p5 = scmp.ge.s32.totalorder %s13_s14, 4   ;;  %s1458_s13 = smov %s1460_s15 }
 0x347   :  { %12 = sbr.rel (!%p10_p5) target bundleno = 2 (0x2), region = 80 }

// kernel: gpt_forward.14
= control target key start
LH: loop header
LB: loop body
LE: loop exit
PB: predicated region body
PF: predicated region fallthrough
CT: control target
= control target key end

     0   :  { %vm29_vm0 = vcmask 261120   ;;  %v218_v15 = vmov 0.0   ;;  %vm219_vm1 = vmmov 0   ;;  %s279_s0 = inlined_call_operand.vmem [shape: f32[16,32], index: 0, kind: input, shape index: {}]   ;;  %s280_s3 = inlined_call_operand.vmem [shape: bf16[32,128], index: 3, kind: input, shape index: {}]   ;;  %s281_s1 = inlined_call_operand.vmem [shape: f32[1,32], index: 1, kind: input, shape index: {}]   ;;  %s282_s2 = inlined_call_operand.vmem [shape: f32[1,32], index: 2, kind: input, shape index: {}]   ;;  %s283_s4 = inlined_call_operand.vmem [shape: f32[1,128], index: 4, kind: input, shape index: {}]   ;;  %s284_s5 = inlined_call_operand.vmem [shape: bf16[16,128], index: 5, kind: output, shape index: {}]  }
   0x1   :  { %v27_v0 = vld [vmem:[%s279_s0] sm:$0xff]  ;;  %v28_v1 = vld [vmem:[%s279_s0 + $0x8] sm:$0xff]  ;;  %198 = vmatprep.subr.bf16.mxu0 %v218_v15  ;;  %202 = vmatprep.mubr.msk.bf16.mxu0 %vm219_vm1, %v218_v15 }
   0x2   :  { %v30_v2 = vsel %vm29_vm0, %v27_v0, 0.0  ;;  %v33_v3 = vsel %vm29_vm0, %v28_v1, 0.0  ;;  %v208_v14 = vld [vmem:[%s280_s3] sm:$0xff]   ;;  %v209_v16 = vld [vmem:[%s280_s3 + $0x8] sm:$0xff]  }
   0x3   :  { %31 = vadd.xlane.f32.xlu0 %v30_v2  ;;  %199 = vmatpush3.bf16.msra.mxu0 %v208_v14  ;;  %v180_v25 = vld [vmem:[%s281_s1] ss:$0 sm:$0xff] }
   0x4   :  { %200 = vmatprep.subr.bf16.mxu0 %v218_v15  ;;  %v181_v29 = vld [vmem:[%s282_s2] ss:$0 sm:$0xff] }
   0x5   :  { %v185_v34 = vld [vmem:[%s283_s4] ss:$0 sm:$0xff] }
   0x7   :  { %34 = vadd.xlane.f32.xlu0 %v33_v3  ;;  %201 = vmatpush3.bf16.msra.mxu0 %v209_v16 }
  0x90   :  { %v32_v4 = vpop.xlane.xlu0 %31 }
  0x91   :  { %v37_v5 = vmul.f32 0.03125, %v32_v4 }
  0x93   :  { %v39_v6 = vsub.f32 %v27_v0, %v37_v5 }
  0x94   :  { %v35_v7 = vpop.xlane.xlu0 %34 }
  0x95   :  { %v38_v8 = vmul.f32 0.03125, %v35_v7  ;;  %v41_v9 = vmul.f32 %v39_v6, %v39_v6 }
  0x97   :  { %v40_v10 = vsub.f32 %v28_v1, %v38_v8  ;;  %v43_v11 = vsel %vm29_vm0, %v41_v9, 0.0 }
  0x98   :  { %44 = vadd.xlane.f32.xlu1 %v43_v11 }
  0x99   :  { %v42_v12 = vmul.f32 %v40_v10, %v40_v10 }
  0x9b   :  { %v46_v13 = vsel %vm29_vm0, %v42_v12, 0.0 }
  0x9c   :  { %47 = vadd.xlane.f32.xlu1 %v46_v13 }
 0x125   :  { %v45_v17 = vpop.xlane.xlu1 %44 }
 0x126   :  { %v49_v18 = vmul.f32 0.03125, %v45_v17 }
 0x128   :  { %v51_v19 = vadd.f32 1e-05, %v49_v18 }
 0x129   :  { %v48_v20 = vpop.xlane.xlu1 %47 }
 0x12a   :  { %210 = vrsqrt.f32 %v51_v19  ;;  %v50_v21 = vmul.f32 0.03125, %v48_v20 }
 0x12c   :  { %v52_v22 = vadd.f32 1e-05, %v50_v21 }
 0x12e   :  { %212 = vrsqrt.f32 %v52_v22 }
 0x134   :  { %v211_v23 = vpop.eup %210 }
 0x135   :  { %v55_v24 = vmul.f32 %v211_v23, %v39_v6 }
 0x137   :  { %v64_v28 = vmul.f32 %v180_v25, %v55_v24 }
 0x138   :  { %v213_v26 = vpop.eup %212 }
 0x139   :  { %v56_v27 = vmul.f32 %v213_v26, %v40_v10  ;;  %v73_v31 = vadd.f32 %v181_v29, %v64_v28 }
 0x13b   :  { %v65_v30 = vmul.f32 %v180_v25, %v56_v27 }
 0x13d   :  { %v74_v32 = vadd.f32 %v181_v29, %v65_v30 }
 0x13f   :  { %v77_v33 = vpack.c.bf16 %v74_v32, %v73_v31 }
 0x141   :  { %203 = vmatmul.mubr.msk.bf16.vlgmr.msra.gmra.mrb[0].mxu0 %vm29_vm0, %v77_v33 }
 0x214   :  { %v131_v35 = vpop.f32.mrb[0].mxu0 }
 0x215   :  { %v154_v36 = vadd.f32 %v185_v34, %v131_v35  ;;  %v204_v37 = vpop.f32.mrb[1].mxu0 }
 0x216   :  { %v134_v38 = vpop.f32.mrb[2].mxu0 }
 0x217   :  { %v158_v39 = vmul.f32 0.70710677, %v154_v36  ;;  %v155_v40 = vadd.f32 %v185_v34, %v134_v38  ;;  %v205_v41 = vpop.f32.mrb[3].mxu0  ;;  %v156_v46 = vmul.f32 0.5, %v154_v36 }
 0x219   :  { %214 = verf.f32 %v158_v39  ;;  %v159_v42 = vmul.f32 0.70710677, %v155_v40  ;;  %v157_v47 = vmul.f32 0.5, %v155_v40 }
 0x21b   :  { %216 = verf.f32 %v159_v42 }
 0x223   :  { %v215_v43 = vpop.eup %214 }
 0x224   :  { %v162_v44 = vadd.f32 1.0, %v215_v43 }
 0x225   :  { %v217_v45 = vpop.eup %216 }
 0x226   :  { %v163_v48 = vadd.f32 1.0, %v217_v45  ;;  %v164_v49 = vmul.f32 %v162_v44, %v156_v46 }
 0x228   :  { %v165_v50 = vmul.f32 %v163_v48, %v157_v47 }
 0x22a   :  { %v193_v51 = vpack.c.bf16 %v165_v50, %v164_v49 }
 0x22c   :  { %194 = vst [vmem:[%s284_s5] sm:$0xff] %v193_v51  }

// kernel: gpt_forward.15
= control target key start
LH: loop header
LB: loop body
LE: loop exit
PB: predicated region body
PF: predicated region fallthrough
CT: control target
= control target key end

     0   :  { %vm22_vm0 = vcmask 261120   ;;  %v219_v0 = vmov 0.0   ;;  %vm220_vm1 = vmmov 0   ;;  %s294_s1 = inlined_call_operand.vmem [shape: bf16[128,32], index: 1, kind: input, shape index: {}]   ;;  %s295_s0 = inlined_call_operand.vmem [shape: bf16[16,128], index: 0, kind: input, shape index: {}]   ;;  %s296_s2 = inlined_call_operand.vmem [shape: f32[1,32], index: 2, kind: input, shape index: {}]   ;;  %s297_s3 = inlined_call_operand.vmem [shape: f32[16,32], index: 3, kind: input, shape index: {}]   ;;  %s298_s4 = inlined_call_operand.vmem [shape: f32[16,32], index: 4, kind: output, shape index: {}]  }
   0x1   :  { %188 = vmatprep.subr.bf16.mxu0 %v219_v0  ;;  %v210_v1 = vld [vmem:[%s294_s1] sm:$0xff]   ;;  %204 = vmatprep.mubr.msk.bf16.mxu0 %vm220_vm1, %v219_v0  ;;  %23 = vst.msk [vmem:[#allocation2] sm:$0xff] %vm22_vm0, %v219_v0  ;;  %24 = vst.msk [vmem:[#allocation2 + $0x8] sm:$0xff] %vm22_vm0, %v219_v0  ;;  %v211_v2 = vld [vmem:[%s294_s1 + $0x8] sm:$0xff]  }
   0x2   :  { %189 = vmatpush3.bf16.msra.mxu0 %v210_v1  ;;  %v212_v3 = vld [vmem:[%s294_s1 + $0x10] sm:$0xff]   ;;  %v213_v4 = vld [vmem:[%s294_s1 + $0x18] sm:$0xff]   ;;  %v214_v5 = vld [vmem:[%s294_s1 + $0x20] sm:$0xff]  }
   0x3   :  { %190 = vmatprep.subr.bf16.mxu0 %v219_v0  ;;  %v215_v6 = vld [vmem:[%s294_s1 + $0x28] sm:$0xff]   ;;  %v216_v7 = vld [vmem:[%s294_s1 + $0x30] sm:$0xff]   ;;  %v217_v8 = vld [vmem:[%s294_s1 + $0x38] sm:$0xff]  }
   0x4   :  { %v218_v9 = vld [vmem:[%s295_s0] sm:$0xff]   ;;  %v160_v22 = vld [vmem:[%s297_s3 + $0x8] sm:$0xff] }
   0x5   :  { %v178_v18 = vld [vmem:[%s296_s2] ss:$0 sm:$0xff] }
   0x6   :  { %191 = vmatpush3.bf16.msra.mxu0 %v211_v2  ;;  %v159_v20 = vld [vmem:[%s297_s3] sm:$0xff] }
   0x7   :  { %192 = vmatprep.subr.bf16.mxu0 %v219_v0 }
   0x8   :  { %v27_v10 = vld [vmem:[#allocation2] sm:$0xff]  ;;  %v28_v12 = vld [vmem:[#allocation2 + $0x8] sm:$0xff] }
   0xa   :  { %193 = vmatpush3.bf16.msra.mxu0 %v212_v3 }
   0xb   :  { %194 = vmatprep.subr.bf16.mxu0 %v219_v0 }
   0xe   :  { %195 = vmatpush3.bf16.msra.mxu0 %v213_v4 }
   0xf   :  { %196 = vmatprep.subr.bf16.mxu0 %v219_v0 }
  0x12   :  { %197 = vmatpush3.bf16.msra.mxu0 %v214_v5 }
  0x13   :  { %198 = vmatprep.subr.bf16.mxu0 %v219_v0 }
  0x16   :  { %199 = vmatpush3.bf16.msra.mxu0 %v215_v6 }
  0x17   :  { %200 = vmatprep.subr.bf16.mxu0 %v219_v0 }
  0x1a   :  { %201 = vmatpush3.bf16.msra.mxu0 %v216_v7 }
  0x1b   :  { %202 = vmatprep.subr.bf16.mxu0 %v219_v0 }
  0x1e   :  { %203 = vmatpush3.bf16.msra.mxu0 %v217_v8 }
  0x21   :  { %205 = vmatmul.mubr.bf16.vlgmr.msra.gmra.mrb[0].mxu0 %v218_v9 }
  0xf4   :  { %v133_v11 = vpop.f32.mrb[0].mxu0 }
  0xf5   :  { %v140_v13 = vadd.f32 %v133_v11, %v27_v10  ;;  %v206_v14 = vpop.f32.mrb[1].mxu0 }
  0xf6   :  { %v136_v15 = vpop.f32.mrb[2].mxu0 }
  0xf7   :  { %143 = vst.msk [vmem:[#allocation2] sm:$0xff] %vm22_vm0, %v140_v13  ;;  %v141_v16 = vadd.f32 %v136_v15, %v28_v12  ;;  %v207_v17 = vpop.f32.mrb[3].mxu0 }
  0xf9   :  { %144 = vst.msk [vmem:[#allocation2 + $0x8] sm:$0xff] %vm22_vm0, %v141_v16 }
  0xfe   :  { %v148_v19 = vld [vmem:[#allocation2] sm:$0xff] }
  0xff   :  { %v157_v21 = vadd.f32 %v178_v18, %v148_v19 }
 0x100   :  { %v149_v23 = vld [vmem:[#allocation2 + $0x8] sm:$0xff] }
 0x101   :  { %v161_v24 = vadd.f32 %v159_v20, %v157_v21  ;;  %v158_v25 = vadd.f32 %v178_v18, %v149_v23 }
 0x103   :  { %163 = vst.msk [vmem:[%s298_s4] sm:$0xff] %vm22_vm0, %v161_v24  ;;  %v162_v26 = vadd.f32 %v160_v22, %v158_v25 }
 0x105   :  { %164 = vst.msk [vmem:[%s298_s4 + $0x8] sm:$0xff] %vm22_vm0, %v162_v26 }

// kernel: gpt_forward.21
= control target key start
LH: loop header
LB: loop body
LE: loop exit
PB: predicated region body
PF: predicated region fallthrough
CT: control target
= control target key end

     0   :  { %vm29_vm0 = vcmask 261120   ;;  %s300_s0 = inlined_call_operand.vmem [shape: f32[16,32], index: 0, kind: input, shape index: {}]   ;;  %s301_s1 = inlined_call_operand.vmem [shape: f32[1,32], index: 1, kind: input, shape index: {}]   ;;  %s302_s2 = inlined_call_operand.vmem [shape: f32[1,32], index: 2, kind: input, shape index: {}]   ;;  %s303_s3 = inlined_call_operand.vmem [shape: bf16[32,256], index: 3, kind: input, shape index: {}]   ;;  %s304_s4 = inlined_call_operand.hbm [shape: f32[16,256], index: 4, kind: output, shape index: {}]  }
   0x1   :  { %v27_v0 = vld [vmem:[%s300_s0] sm:$0xff]  ;;  %v28_v1 = vld [vmem:[%s300_s0 + $0x8] sm:$0xff] }
   0x2   :  { %v30_v2 = vsel %vm29_vm0, %v27_v0, 0.0 }
   0x3   :  { %31 = vadd.xlane.f32.xlu0 %v30_v2 }
   0x4   :  { %9 = vsyncpa [#allocation4], 0  ;;  %v33_v3 = vsel %vm29_vm0, %v28_v1, 0.0  ;;  %v196_v14 = vld [vmem:[%s303_s3 + $0x4] ss:$8 sps:$4 sm:$0xff]   ;;  %v230_v18 = vmov 0  }
   0x5   :  { %v198_v15 = vld [vmem:[%s303_s3] ss:$8 sps:$4 sm:$0xff]   ;;  %107 = vmatprep.subr.bf16.mxu0 %v196_v14  ;;  %v199_v16 = vld [vmem:[%s303_s3 + $0x14] ss:$8 sps:$4 sm:$0xff]   ;;  %v201_v17 = vld [vmem:[%s303_s3 + $0x10] ss:$8 sps:$4 sm:$0xff]   ;;  %139 = vmatprep.mubr.bf16.mxu0 %v230_v18 }
   0x6   :  { %108 = vmatpush1.bf16.msra.mxu0 %v198_v15  ;;  %v185_v27 = vld [vmem:[%s301_s1] ss:$0 sm:$0xff]  ;;  %s231_s29 = smov [#allocation3]  }
   0x7   :  { %34 = vadd.xlane.f32.xlu0 %v33_v3  ;;  %109 = vmatprep.subr.bf16.mxu0 %v199_v16  ;;  %v186_v31 = vld [vmem:[%s302_s2] ss:$0 sm:$0xff]  ;;  %s174_s30 = sshll.u32 %s231_s29, 4  ;;  %s175_s30 = int_to_ptr.vmem [resolvable:$true] %s174_s30 }
   0x8   :  { %s206_s1 = scalar_lea.vmem %s175_s30, 512  ;;  %p211_p1 = scmp.lt.s32.totalorder %s175_s30, %s175_s30 }
   0x9   :  { %p207_p0 = scmp.ne.s32.totalorder %s175_s30, %s206_s1  ;;  %p212_p2 = scmp.lt.s32.totalorder %s206_s1, %s206_s1 }
   0xa   :  { %110 = vmatpush1.bf16.msra.mxu0 %v201_v17 }
   0xb   :  { %p213_p3 = por %p212_p2, %p211_p1 }
   0xd   :  { %p214_p4 = pnand %p213_p3, %p207_p0 }
  0x90   :  { %v32_v4 = vpop.xlane.xlu0 %31 }
  0x91   :  { %v37_v5 = vmul.f32 0.03125, %v32_v4 }
  0x93   :  { %v39_v6 = vsub.f32 %v27_v0, %v37_v5 }
  0x94   :  { %v35_v7 = vpop.xlane.xlu0 %34 }
  0x95   :  { %v38_v8 = vmul.f32 0.03125, %v35_v7  ;;  %v41_v9 = vmul.f32 %v39_v6, %v39_v6 }
  0x97   :  { %v40_v10 = vsub.f32 %v28_v1, %v38_v8  ;;  %v43_v11 = vsel %vm29_vm0, %v41_v9, 0.0 }
  0x98   :  { %44 = vadd.xlane.f32.xlu1 %v43_v11 }
  0x99   :  { %v42_v12 = vmul.f32 %v40_v10, %v40_v10 }
  0x9b   :  { %v46_v13 = vsel %vm29_vm0, %v42_v12, 0.0 }
  0x9c   :  { %47 = vadd.xlane.f32.xlu1 %v46_v13 }
 0x125   :  { %v45_v19 = vpop.xlane.xlu1 %44 }
 0x126   :  { %v49_v20 = vmul.f32 0.03125, %v45_v19 }
 0x128   :  { %v51_v21 = vadd.f32 1e-05, %v49_v20 }
 0x129   :  { %v48_v22 = vpop.xlane.xlu1 %47 }
 0x12a   :  { %202 = vrsqrt.f32 %v51_v21  ;;  %v50_v23 = vmul.f32 0.03125, %v48_v22 }
 0x12c   :  { %v52_v24 = vadd.f32 1e-05, %v50_v23 }
 0x12e   :  { %204 = vrsqrt.f32 %v52_v24 }
 0x134   :  { %v203_v25 = vpop.eup %202 }
 0x135   :  { %v55_v26 = vmul.f32 %v203_v25, %v39_v6 }
 0x137   :  { %v64_v30 = vmul.f32 %v185_v27, %v55_v26 }
 0x138   :  { %v205_v28 = vpop.eup %204 }
 0x139   :  { %v56_v29 = vmul.f32 %v205_v28, %v40_v10  ;;  %v73_v33 = vadd.f32 %v186_v31, %v64_v30 }
 0x13b   :  { %v65_v32 = vmul.f32 %v185_v27, %v56_v29 }
 0x13d   :  { %v74_v34 = vadd.f32 %v186_v31, %v65_v32 }
 0x13f   :  { %v79_v35 = vpack.c.bf16 %v74_v34, %v73_v33 }
 0x141   :  { %191 = vmatmul.mubr.msk.bf16.vlgmr.msra.gmra.mrb[0].mxu0 %vm29_vm0, %v79_v35 }
 0x214   :  { %v141_v36 = vpop.f32.mrb[0].mxu0 }
 0x215   :  { %165 = vst [vmem:[#allocation3] sm:$0xff] %v141_v36  ;;  %v143_v37 = vpop.f32.mrb[1].mxu0 }
 0x216   :  { %166 = vst [vmem:[#allocation3 + $0x8] sm:$0xff] %v143_v37  ;;  %v145_v38 = vpop.f32.mrb[2].mxu0 }
 0x217   :  { %167 = vst [vmem:[#allocation3 + $0x10] sm:$0xff] %v145_v38  ;;  %v147_v39 = vpop.f32.mrb[3].mxu0 }
 0x218   :  { %168 = vst [vmem:[#allocation3 + $0x18] sm:$0xff] %v147_v39 }
 0x219   :  { %217 = shalt.err (!%p214_p4)
}
 0x21a   :  { %s218_s6 = scalar_lea.hbm %s304_s4, 512 }
 0x21b   :  { %p219_p5 = scmp.ne.s32.totalorder %s304_s4, %s218_s6  ;;  %p222_p6 = scmp.lt.u32.totalorder %s218_s6, %s304_s4 }
 0x21d   :  { %p224_p7 = pnand %p222_p6, %p219_p5 }
 0x21f   :  { %227 = shalt.err (!%p224_p7)
}
 0x220   :  { %s232_s11 = smov 256   ;;  %s233_s12 = smov 16  }
 0x221   :  { %180 = dma.vmem_to_hbm [thread:$0]  %s175_s30, 512, %s304_s4, [#allocation4], %s232_s11, %s232_s11, %s233_s12  }
 0x222   :  { %228 = dma.done.wait [#allocation4], 512  }
 0x223   :  { %229 = vsyncadd [#allocation4], 4294966784 }
 0x224   :  { %184 = vsyncpa [#allocation4], 1 }

</bundles_post_ra>
